<compile_context>
chip_gen: v5e
topology: v5e:2x2
jax: 0.10.0
libtpu: 0.0.40
codegen_flags: <defaults>
</compile_context>

<pallas_src>
import jax
import jax.numpy as jnp
from jax import lax
from jax.experimental import pallas as pl
from jax.experimental.pallas import tpu as pltpu


def _round_up(x, m):
    return (x + m - 1) // m * m


# ---------------------------------------------------------------------------
# Pallas kernels
# ---------------------------------------------------------------------------
def _gru_recurrence_kernel(gi_ref, whh_ref, bhn_ref, h_out_ref, h_ref):
    """One grid step == one chunk of Tc timesteps.

    gi_ref   : (Tc, Bp, 3*Hp)  precomputed input projection (+ folded r/z biases)
    whh_ref  : (Hp, 3*Hp)      recurrent weight (pre-transposed), resident across chunks
    bhn_ref  : (1, Hp)         hidden bias of the n-gate (must stay inside r * (.))
    h_out_ref: (Tc, Bp, Hp)    per-timestep hidden states (lane-dense: Hp % 128 == 0)
    h_ref    : (Bp, Hp)        VMEM scratch carrying h across grid steps
    """
    c = pl.program_id(0)

    @pl.when(c == 0)
    def _():
        h_ref[...] = jnp.zeros_like(h_ref)

    tc = gi_ref.shape[0]
    bp, hp = h_ref.shape

    whh = whh_ref[...]                              # load once per chunk
    bhn = jnp.broadcast_to(bhn_ref[...], (bp, hp))  # hoisted out of the timestep loop

    def step(t, h):
        gi = gi_ref[t]                              # (Bp, 3Hp), leading-axis slice
        gh = jnp.dot(h, whh, preferred_element_type=jnp.float32)
        r = jax.nn.sigmoid(gi[:, :hp] + gh[:, :hp])
        z = jax.nn.sigmoid(gi[:, hp:2 * hp] + gh[:, hp:2 * hp])
        n = jnp.tanh(gi[:, 2 * hp:] + r * (gh[:, 2 * hp:] + bhn))
        h_new = (1.0 - z) * n + z * h
        h_out_ref[t] = h_new
        return h_new

    # Keep h in vregs across the short, unrolled in-chunk loop.
    h_ref[...] = lax.fori_loop(0, tc, step, h_ref[...], unroll=True)


def _matmul_bias_kernel(a_ref, w_ref, b_ref, o_ref):
    o_ref[...] = (jnp.dot(a_ref[...], w_ref[...],
                          preferred_element_type=jnp.float32)
                  + b_ref[...]).astype(o_ref.dtype)


def _matmul_bias(a, w, b):
    """(M, K) @ (K, N) + (1, N) as a single-block Pallas call (everything fits in VMEM)."""
    m, k = a.shape
    n = w.shape[1]
    return pl.pallas_call(
        _matmul_bias_kernel,
        out_shape=jax.ShapeDtypeStruct((m, n), jnp.float32),
        grid=(1,),
        in_specs=[
            pl.BlockSpec((m, k), lambda i: (0, 0)),
            pl.BlockSpec((k, n), lambda i: (0, 0)),
            pl.BlockSpec((1, n), lambda i: (0, 0)),
        ],
        out_specs=pl.BlockSpec((m, n), lambda i: (0, 0)),
    )(a, w, b)


# ---------------------------------------------------------------------------
# Forward wrapper
# ---------------------------------------------------------------------------
def vanilla_gru_forward(x_btf, params, *, tc=8):
    """x_btf: (B, T, F) float32. Returns (T, B, O) — stacked per-step outputs."""
    x_btf = x_btf.astype(jnp.float32)
    B, T, F = x_btf.shape
    H = params["w_hh"].shape[0]
    O = params["w_out"].shape[1]

    Bp = _round_up(B, 8)       # sublane alignment
    Hp = _round_up(H, 128)     # lane alignment -> aligned gate slices, lane-dense stores
    Tc = max(1, min(tc, T))    # timesteps per grid step
    T_pad = _round_up(T, Tc)
    G = 3 * Hp

    def pad_gate_cols(a):      # (rows, 3H) -> (rows, 3Hp); zero-pad each gate slab
        parts = [jnp.pad(a[:, g * H:(g + 1) * H], ((0, 0), (0, Hp - H)))
                 for g in range(3)]
        return jnp.concatenate(parts, axis=-1)

    w_ih_p = pad_gate_cols(params["w_ih"])                                   # (F, 3Hp)
    w_hh_p = jnp.pad(pad_gate_cols(params["w_hh"]), ((0, Hp - H), (0, 0)))   # (Hp, 3Hp)
    # Fold b_ih and the r/z parts of b_hh into the batched input projection; the n-gate
    # hidden bias must stay inside r * (.) and is applied in-kernel.
    b_rz_fold = params["b_ih"] + jnp.concatenate(
        [params["b_hh"][:, :2 * H], jnp.zeros((1, H), jnp.float32)], axis=-1)
    bias_fold_p = pad_gate_cols(b_rz_fold)                                   # (1, 3Hp)
    b_hn_p = jnp.pad(params["b_hh"][:, 2 * H:], ((0, 0), (0, Hp - H)))       # (1, Hp)
    w_out_p = jnp.pad(params["w_out"], ((0, Hp - H), (0, 0)))                # (Hp, O)

    # ---- Phase 1: batched input projection for ALL timesteps (one big matmul).
    # 'btf,fg->tbg' produces the time-major layout directly (no standalone x transpose).
    x_p = jnp.pad(x_btf, ((0, Bp - B), (0, T_pad - T), (0, 0)))              # (Bp, T_pad, F)
    gi = jnp.einsum("btf,fg->tbg", x_p, w_ih_p) + bias_fold_p                # (T_pad, Bp, 3Hp)

    # ---- Phase 2: sequential recurrence (Pallas), Tc timesteps per grid step.
    h_all = pl.pallas_call(
        _gru_recurrence_kernel,
        out_shape=jax.ShapeDtypeStruct((T_pad, Bp, Hp), jnp.float32),
        grid_spec=pltpu.PrefetchScalarGridSpec(
            num_scalar_prefetch=0,
            grid=(T_pad // Tc,),
            in_specs=[
                pl.BlockSpec((Tc, Bp, G), lambda c: (c, 0, 0)),   # gi chunk for this step
                pl.BlockSpec((Hp, G), lambda c: (0, 0)),          # W_hh (resident)
                pl.BlockSpec((1, Hp), lambda c: (0, 0)),          # b_hn
            ],
            out_specs=pl.BlockSpec((Tc, Bp, Hp), lambda c: (c, 0, 0)),
            scratch_shapes=[pltpu.VMEM((Bp, Hp), jnp.float32)],   # hidden-state carry
        ),
        compiler_params=pltpu.CompilerParams(
            dimension_semantics=("arbitrary",)),                  # recurrence is sequential
    )(gi, w_hh_p, b_hn_p)

    # ---- Phase 3: output head for ALL timesteps at once (out of the recurrent path).
    out_flat = _matmul_bias(h_all.reshape(T_pad * Bp, Hp), w_out_p, params["b_out"])
    out = out_flat.reshape(T_pad, Bp, O)[:T, :B, :]
    return out


# ---------------------------------------------------------------------------
# Params & pure-JAX reference (PyTorch semantics, n_layers=1)
# ---------------------------------------------------------------------------
def init_params(key, input_size, hidden_size, output_size):
    """Deterministic init mirroring PyTorch's U(-1/sqrt(H), 1/sqrt(H)) for GRUCell/Linear."""
    ks = jax.random.split(key, 6)
    bound = 1.0 / jnp.sqrt(hidden_size)
    u = lambda k, shape: jax.random.uniform(k, shape, jnp.float32, -bound, bound)
    return {
        # stored transposed relative to PyTorch (so kernels do x @ W)
        "w_ih": u(ks[0], (input_size, 3 * hidden_size)),
        "w_hh": u(ks[1], (hidden_size, 3 * hidden_size)),
        "b_ih": u(ks[2], (1, 3 * hidden_size)),
        "b_hh": u(ks[3], (1, 3 * hidden_size)),
        "w_out": u(ks[4], (hidden_size, output_size)),
        "b_out": u(ks[5], (1, output_size)),
    }


def _reference_forward(x_btf, params):
    """Pure-JAX reference of the PyTorch forward (n_layers=1)."""
    B, T, F = x_btf.shape
    H = params["w_hh"].shape[0]
    h = jnp.zeros((B, H), jnp.float32)
    outs = []
    for t in range(T):
        xt = x_btf[:, t, :]
        gi = xt @ params["w_ih"] + params["b_ih"]
        gh = h @ params["w_hh"] + params["b_hh"]
        r = jax.nn.sigmoid(gi[:, :H] + gh[:, :H])
        z = jax.nn.sigmoid(gi[:, H:2 * H] + gh[:, H:2 * H])
        n = jnp.tanh(gi[:, 2 * H:] + r * gh[:, 2 * H:])
        h = (1.0 - z) * n + z * h
        outs.append(h @ params["w_out"] + params["b_out"])
    return jnp.stack(outs, axis=0)  # (T, B, O)


if __name__ == "__main__":
    B, T, F, H, O = 2, 8, 16, 32, 8   # batch, seq, input_size, hidden_size, output_size

    key = jax.random.PRNGKey(0)
    k_x, k_p = jax.random.split(key)
    x = jax.random.normal(k_x, (B, T, F), jnp.float32)
    params = init_params(k_p, F, H, O)

    out = jax.block_until_ready(vanilla_gru_forward(x, params))

    ref = _reference_forward(x, params)
    assert out.shape == (T, B, O)
    assert jnp.allclose(out, ref, atol=1e-4, rtol=1e-4), "mismatch vs pure-JAX reference"

    print("KERNEL_OK")
</pallas_src>

<mosaic_0001>
module attributes {stable_mosaic.version = 11 : i64} {
  func.func @_gru_recurrence_kernel(%arg0: i32, %arg1: memref<8x8x384xf32, #tpu.memory_space<vmem>>, %arg2: memref<128x384xf32, #tpu.memory_space<vmem>>, %arg3: memref<1x128xf32, #tpu.memory_space<vmem>>, %arg4: memref<8x8x128xf32, #tpu.memory_space<vmem>>, %arg5: memref<8x128xf32, #tpu.memory_space<vmem>>) attributes {dimension_semantics = [#tpu.dimension_semantics<arbitrary>], iteration_bounds = array<i64: 1>, scalar_prefetch = 0 : i64, scratch_operands = 1 : i64, tpu.core_type = #tpu.core_type<tc>, window_params = [{transform_indices = @transform_0, window_bounds = array<i64: 8, 8, 384>}, {pipeline_mode = #tpu.pipeline_mode<synchronous>, transform_indices = @transform_1, window_bounds = array<i64: 128, 384>}, {pipeline_mode = #tpu.pipeline_mode<synchronous>, transform_indices = @transform_2, window_bounds = array<i64: 1, 128>}, {transform_indices = @transform_3, window_bounds = array<i64: 8, 8, 128>}]} {
    %c0_i32 = arith.constant 0 : i32
    %0 = arith.cmpi eq, %arg0, %c0_i32 : i32
    %1 = arith.extui %0 : i1 to i32
    %c0_i32_0 = arith.constant 0 : i32
    %2 = arith.cmpi ne, %1, %c0_i32_0 : i32
    scf.if %2 {
      %cst_72 = arith.constant 0.000000e+00 : f32
      %289 = vector.broadcast %cst_72 : f32 to vector<8x128xf32>
      %c0_73 = arith.constant 0 : index
      %c0_74 = arith.constant 0 : index
      %290 = vector.load %arg5[%c0_73, %c0_74] : memref<8x128xf32, #tpu.memory_space<vmem>>, vector<8x128xf32>
      tpu.vector_store %arg5[%c0_73, %c0_74], %289 {strides = array<i32>} : memref<8x128xf32, #tpu.memory_space<vmem>>, vector<8x128xf32>,
    } else {
    }
    %c0 = arith.constant 0 : index
    %c0_1 = arith.constant 0 : index
    %3 = vector.load %arg2[%c0, %c0_1] : memref<128x384xf32, #tpu.memory_space<vmem>>, vector<128x384xf32>
    %c0_2 = arith.constant 0 : index
    %c0_3 = arith.constant 0 : index
    %4 = vector.load %arg3[%c0_2, %c0_3] : memref<1x128xf32, #tpu.memory_space<vmem>>, vector<1x128xf32>
    %5 = vector.shape_cast %4 : vector<1x128xf32> to vector<1x128xf32>
    %6 = vector.broadcast %5 : vector<1x128xf32> to vector<8x128xf32>
    %c0_4 = arith.constant 0 : index
    %c0_5 = arith.constant 0 : index
    %7 = vector.load %arg5[%c0_4, %c0_5] : memref<8x128xf32, #tpu.memory_space<vmem>>, vector<8x128xf32>
    %c0_i32_6 = arith.constant 0 : i32
    %8 = arith.index_cast %c0_i32_6 : i32 to index
    %c0_7 = arith.constant 0 : index
    %c0_8 = arith.constant 0 : index
    %9 = vector.load %arg1[%8, %c0_7, %c0_8] : memref<8x8x384xf32, #tpu.memory_space<vmem>>, vector<1x8x384xf32>
    %10 = vector.shape_cast %9 : vector<1x8x384xf32> to vector<8x384xf32>
    %cst = arith.constant dense<0.000000e+00> : vector<8x384xf32>
    %11 = tpu.matmul %7, %3, %cst {dimension_numbers = #tpu.dot_dimension_numbers<[1], [0], [0], [1], [0, 0, 1, 1], [], []>} : vector<8x128xf32>, vector<128x384xf32>, vector<8x384xf32> -> vector<8x384xf32>
    %12 = vector.extract_strided_slice %10 {offsets = [0, 0], sizes = [8, 128], strides = [1, 1]} : vector<8x384xf32> to vector<8x128xf32>
    %13 = vector.extract_strided_slice %11 {offsets = [0, 0], sizes = [8, 128], strides = [1, 1]} : vector<8x384xf32> to vector<8x128xf32>
    %14 = arith.addf %12, %13 : vector<8x128xf32>
    %15 = arith.negf %14 : vector<8x128xf32>
    %16 = math.exp %15 : vector<8x128xf32>
    %cst_9 = arith.constant 1.000000e+00 : f32
    %17 = vector.broadcast %cst_9 : f32 to vector<8x128xf32>
    %18 = arith.addf %17, %16 : vector<8x128xf32>
    %19 = arith.divf %17, %18 : vector<8x128xf32>
    %20 = vector.extract_strided_slice %10 {offsets = [0, 128], sizes = [8, 128], strides = [1, 1]} : vector<8x384xf32> to vector<8x128xf32>
    %21 = vector.extract_strided_slice %11 {offsets = [0, 128], sizes = [8, 128], strides = [1, 1]} : vector<8x384xf32> to vector<8x128xf32>
    %22 = arith.addf %20, %21 : vector<8x128xf32>
    %23 = arith.negf %22 : vector<8x128xf32>
    %24 = math.exp %23 : vector<8x128xf32>
    %cst_10 = arith.constant 1.000000e+00 : f32
    %25 = vector.broadcast %cst_10 : f32 to vector<8x128xf32>
    %26 = arith.addf %25, %24 : vector<8x128xf32>
    %27 = arith.divf %25, %26 : vector<8x128xf32>
    %28 = vector.extract_strided_slice %10 {offsets = [0, 256], sizes = [8, 128], strides = [1, 1]} : vector<8x384xf32> to vector<8x128xf32>
    %29 = vector.extract_strided_slice %11 {offsets = [0, 256], sizes = [8, 128], strides = [1, 1]} : vector<8x384xf32> to vector<8x128xf32>
    %30 = arith.addf %29, %6 : vector<8x128xf32>
    %31 = arith.mulf %19, %30 : vector<8x128xf32>
    %32 = arith.addf %28, %31 : vector<8x128xf32>
    %33 = math.tanh %32 : vector<8x128xf32>
    %cst_11 = arith.constant 1.000000e+00 : f32
    %34 = vector.broadcast %cst_11 : f32 to vector<8x128xf32>
    %35 = arith.subf %34, %27 : vector<8x128xf32>
    %36 = arith.mulf %35, %33 : vector<8x128xf32>
    %37 = arith.mulf %27, %7 : vector<8x128xf32>
    %38 = arith.addf %36, %37 : vector<8x128xf32>
    %39 = arith.index_cast %c0_i32_6 : i32 to index
    %c0_12 = arith.constant 0 : index
    %c0_13 = arith.constant 0 : index
    %40 = vector.load %arg4[%39, %c0_12, %c0_13] : memref<8x8x128xf32, #tpu.memory_space<vmem>>, vector<1x8x128xf32>
    %41 = vector.shape_cast %40 : vector<1x8x128xf32> to vector<8x128xf32>
    %42 = vector.shape_cast %38 : vector<8x128xf32> to vector<1x8x128xf32>
    tpu.vector_store %arg4[%39, %c0_12, %c0_13], %42 {strides = array<i32>} : memref<8x8x128xf32, #tpu.memory_space<vmem>>, vector<1x8x128xf32>,
    %c1_i32 = arith.constant 1 : i32
    %43 = arith.index_cast %c1_i32 : i32 to index
    %c0_14 = arith.constant 0 : index
    %c0_15 = arith.constant 0 : index
    %44 = vector.load %arg1[%43, %c0_14, %c0_15] : memref<8x8x384xf32, #tpu.memory_space<vmem>>, vector<1x8x384xf32>
    %45 = vector.shape_cast %44 : vector<1x8x384xf32> to vector<8x384xf32>
    %cst_16 = arith.constant dense<0.000000e+00> : vector<8x384xf32>
    %46 = tpu.matmul %38, %3, %cst_16 {dimension_numbers = #tpu.dot_dimension_numbers<[1], [0], [0], [1], [0, 0, 1, 1], [], []>} : vector<8x128xf32>, vector<128x384xf32>, vector<8x384xf32> -> vector<8x384xf32>
    %47 = vector.extract_strided_slice %45 {offsets = [0, 0], sizes = [8, 128], strides = [1, 1]} : vector<8x384xf32> to vector<8x128xf32>
    %48 = vector.extract_strided_slice %46 {offsets = [0, 0], sizes = [8, 128], strides = [1, 1]} : vector<8x384xf32> to vector<8x128xf32>
    %49 = arith.addf %47, %48 : vector<8x128xf32>
    %50 = arith.negf %49 : vector<8x128xf32>
    %51 = math.exp %50 : vector<8x128xf32>
    %cst_17 = arith.constant 1.000000e+00 : f32
    %52 = vector.broadcast %cst_17 : f32 to vector<8x128xf32>
    %53 = arith.addf %52, %51 : vector<8x128xf32>
    %54 = arith.divf %52, %53 : vector<8x128xf32>
    %55 = vector.extract_strided_slice %45 {offsets = [0, 128], sizes = [8, 128], strides = [1, 1]} : vector<8x384xf32> to vector<8x128xf32>
    %56 = vector.extract_strided_slice %46 {offsets = [0, 128], sizes = [8, 128], strides = [1, 1]} : vector<8x384xf32> to vector<8x128xf32>
    %57 = arith.addf %55, %56 : vector<8x128xf32>
    %58 = arith.negf %57 : vector<8x128xf32>
    %59 = math.exp %58 : vector<8x128xf32>
    %cst_18 = arith.constant 1.000000e+00 : f32
    %60 = vector.broadcast %cst_18 : f32 to vector<8x128xf32>
    %61 = arith.addf %60, %59 : vector<8x128xf32>
    %62 = arith.divf %60, %61 : vector<8x128xf32>
    %63 = vector.extract_strided_slice %45 {offsets = [0, 256], sizes = [8, 128], strides = [1, 1]} : vector<8x384xf32> to vector<8x128xf32>
    %64 = vector.extract_strided_slice %46 {offsets = [0, 256], sizes = [8, 128], strides = [1, 1]} : vector<8x384xf32> to vector<8x128xf32>
    %65 = arith.addf %64, %6 : vector<8x128xf32>
    %66 = arith.mulf %54, %65 : vector<8x128xf32>
    %67 = arith.addf %63, %66 : vector<8x128xf32>
    %68 = math.tanh %67 : vector<8x128xf32>
    %cst_19 = arith.constant 1.000000e+00 : f32
    %69 = vector.broadcast %cst_19 : f32 to vector<8x128xf32>
    %70 = arith.subf %69, %62 : vector<8x128xf32>
    %71 = arith.mulf %70, %68 : vector<8x128xf32>
    %72 = arith.mulf %62, %38 : vector<8x128xf32>
    %73 = arith.addf %71, %72 : vector<8x128xf32>
    %74 = arith.index_cast %c1_i32 : i32 to index
    %c0_20 = arith.constant 0 : index
    %c0_21 = arith.constant 0 : index
    %75 = vector.load %arg4[%74, %c0_20, %c0_21] : memref<8x8x128xf32, #tpu.memory_space<vmem>>, vector<1x8x128xf32>
    %76 = vector.shape_cast %75 : vector<1x8x128xf32> to vector<8x128xf32>
    %77 = vector.shape_cast %73 : vector<8x128xf32> to vector<1x8x128xf32>
    tpu.vector_store %arg4[%74, %c0_20, %c0_21], %77 {strides = array<i32>} : memref<8x8x128xf32, #tpu.memory_space<vmem>>, vector<1x8x128xf32>,
    %c2_i32 = arith.constant 2 : i32
    %78 = arith.index_cast %c2_i32 : i32 to index
    %c0_22 = arith.constant 0 : index
    %c0_23 = arith.constant 0 : index
    %79 = vector.load %arg1[%78, %c0_22, %c0_23] : memref<8x8x384xf32, #tpu.memory_space<vmem>>, vector<1x8x384xf32>
    %80 = vector.shape_cast %79 : vector<1x8x384xf32> to vector<8x384xf32>
    %cst_24 = arith.constant dense<0.000000e+00> : vector<8x384xf32>
    %81 = tpu.matmul %73, %3, %cst_24 {dimension_numbers = #tpu.dot_dimension_numbers<[1], [0], [0], [1], [0, 0, 1, 1], [], []>} : vector<8x128xf32>, vector<128x384xf32>, vector<8x384xf32> -> vector<8x384xf32>
    %82 = vector.extract_strided_slice %80 {offsets = [0, 0], sizes = [8, 128], strides = [1, 1]} : vector<8x384xf32> to vector<8x128xf32>
    %83 = vector.extract_strided_slice %81 {offsets = [0, 0], sizes = [8, 128], strides = [1, 1]} : vector<8x384xf32> to vector<8x128xf32>
    %84 = arith.addf %82, %83 : vector<8x128xf32>
    %85 = arith.negf %84 : vector<8x128xf32>
    %86 = math.exp %85 : vector<8x128xf32>
    %cst_25 = arith.constant 1.000000e+00 : f32
    %87 = vector.broadcast %cst_25 : f32 to vector<8x128xf32>
    %88 = arith.addf %87, %86 : vector<8x128xf32>
    %89 = arith.divf %87, %88 : vector<8x128xf32>
    %90 = vector.extract_strided_slice %80 {offsets = [0, 128], sizes = [8, 128], strides = [1, 1]} : vector<8x384xf32> to vector<8x128xf32>
    %91 = vector.extract_strided_slice %81 {offsets = [0, 128], sizes = [8, 128], strides = [1, 1]} : vector<8x384xf32> to vector<8x128xf32>
    %92 = arith.addf %90, %91 : vector<8x128xf32>
    %93 = arith.negf %92 : vector<8x128xf32>
    %94 = math.exp %93 : vector<8x128xf32>
    %cst_26 = arith.constant 1.000000e+00 : f32
    %95 = vector.broadcast %cst_26 : f32 to vector<8x128xf32>
    %96 = arith.addf %95, %94 : vector<8x128xf32>
    %97 = arith.divf %95, %96 : vector<8x128xf32>
    %98 = vector.extract_strided_slice %80 {offsets = [0, 256], sizes = [8, 128], strides = [1, 1]} : vector<8x384xf32> to vector<8x128xf32>
    %99 = vector.extract_strided_slice %81 {offsets = [0, 256], sizes = [8, 128], strides = [1, 1]} : vector<8x384xf32> to vector<8x128xf32>
    %100 = arith.addf %99, %6 : vector<8x128xf32>
    %101 = arith.mulf %89, %100 : vector<8x128xf32>
    %102 = arith.addf %98, %101 : vector<8x128xf32>
    %103 = math.tanh %102 : vector<8x128xf32>
    %cst_27 = arith.constant 1.000000e+00 : f32
    %104 = vector.broadcast %cst_27 : f32 to vector<8x128xf32>
    %105 = arith.subf %104, %97 : vector<8x128xf32>
    %106 = arith.mulf %105, %103 : vector<8x128xf32>
    %107 = arith.mulf %97, %73 : vector<8x128xf32>
    %108 = arith.addf %106, %107 : vector<8x128xf32>
    %109 = arith.index_cast %c2_i32 : i32 to index
    %c0_28 = arith.constant 0 : index
    %c0_29 = arith.constant 0 : index
    %110 = vector.load %arg4[%109, %c0_28, %c0_29] : memref<8x8x128xf32, #tpu.memory_space<vmem>>, vector<1x8x128xf32>
    %111 = vector.shape_cast %110 : vector<1x8x128xf32> to vector<8x128xf32>
    %112 = vector.shape_cast %108 : vector<8x128xf32> to vector<1x8x128xf32>
    tpu.vector_store %arg4[%109, %c0_28, %c0_29], %112 {strides = array<i32>} : memref<8x8x128xf32, #tpu.memory_space<vmem>>, vector<1x8x128xf32>,
    %c3_i32 = arith.constant 3 : i32
    %113 = arith.index_cast %c3_i32 : i32 to index
    %c0_30 = arith.constant 0 : index
    %c0_31 = arith.constant 0 : index
    %114 = vector.load %arg1[%113, %c0_30, %c0_31] : memref<8x8x384xf32, #tpu.memory_space<vmem>>, vector<1x8x384xf32>
    %115 = vector.shape_cast %114 : vector<1x8x384xf32> to vector<8x384xf32>
    %cst_32 = arith.constant dense<0.000000e+00> : vector<8x384xf32>
    %116 = tpu.matmul %108, %3, %cst_32 {dimension_numbers = #tpu.dot_dimension_numbers<[1], [0], [0], [1], [0, 0, 1, 1], [], []>} : vector<8x128xf32>, vector<128x384xf32>, vector<8x384xf32> -> vector<8x384xf32>
    %117 = vector.extract_strided_slice %115 {offsets = [0, 0], sizes = [8, 128], strides = [1, 1]} : vector<8x384xf32> to vector<8x128xf32>
    %118 = vector.extract_strided_slice %116 {offsets = [0, 0], sizes = [8, 128], strides = [1, 1]} : vector<8x384xf32> to vector<8x128xf32>
    %119 = arith.addf %117, %118 : vector<8x128xf32>
    %120 = arith.negf %119 : vector<8x128xf32>
    %121 = math.exp %120 : vector<8x128xf32>
    %cst_33 = arith.constant 1.000000e+00 : f32
    %122 = vector.broadcast %cst_33 : f32 to vector<8x128xf32>
    %123 = arith.addf %122, %121 : vector<8x128xf32>
    %124 = arith.divf %122, %123 : vector<8x128xf32>
    %125 = vector.extract_strided_slice %115 {offsets = [0, 128], sizes = [8, 128], strides = [1, 1]} : vector<8x384xf32> to vector<8x128xf32>
    %126 = vector.extract_strided_slice %116 {offsets = [0, 128], sizes = [8, 128], strides = [1, 1]} : vector<8x384xf32> to vector<8x128xf32>
    %127 = arith.addf %125, %126 : vector<8x128xf32>
    %128 = arith.negf %127 : vector<8x128xf32>
    %129 = math.exp %128 : vector<8x128xf32>
    %cst_34 = arith.constant 1.000000e+00 : f32
    %130 = vector.broadcast %cst_34 : f32 to vector<8x128xf32>
    %131 = arith.addf %130, %129 : vector<8x128xf32>
    %132 = arith.divf %130, %131 : vector<8x128xf32>
    %133 = vector.extract_strided_slice %115 {offsets = [0, 256], sizes = [8, 128], strides = [1, 1]} : vector<8x384xf32> to vector<8x128xf32>
    %134 = vector.extract_strided_slice %116 {offsets = [0, 256], sizes = [8, 128], strides = [1, 1]} : vector<8x384xf32> to vector<8x128xf32>
    %135 = arith.addf %134, %6 : vector<8x128xf32>
    %136 = arith.mulf %124, %135 : vector<8x128xf32>
    %137 = arith.addf %133, %136 : vector<8x128xf32>
    %138 = math.tanh %137 : vector<8x128xf32>
    %cst_35 = arith.constant 1.000000e+00 : f32
    %139 = vector.broadcast %cst_35 : f32 to vector<8x128xf32>
    %140 = arith.subf %139, %132 : vector<8x128xf32>
    %141 = arith.mulf %140, %138 : vector<8x128xf32>
    %142 = arith.mulf %132, %108 : vector<8x128xf32>
    %143 = arith.addf %141, %142 : vector<8x128xf32>
    %144 = arith.index_cast %c3_i32 : i32 to index
    %c0_36 = arith.constant 0 : index
    %c0_37 = arith.constant 0 : index
    %145 = vector.load %arg4[%144, %c0_36, %c0_37] : memref<8x8x128xf32, #tpu.memory_space<vmem>>, vector<1x8x128xf32>
    %146 = vector.shape_cast %145 : vector<1x8x128xf32> to vector<8x128xf32>
    %147 = vector.shape_cast %143 : vector<8x128xf32> to vector<1x8x128xf32>
    tpu.vector_store %arg4[%144, %c0_36, %c0_37], %147 {strides = array<i32>} : memref<8x8x128xf32, #tpu.memory_space<vmem>>, vector<1x8x128xf32>,
    %c4_i32 = arith.constant 4 : i32
    %148 = arith.index_cast %c4_i32 : i32 to index
    %c0_38 = arith.constant 0 : index
    %c0_39 = arith.constant 0 : index
    %149 = vector.load %arg1[%148, %c0_38, %c0_39] : memref<8x8x384xf32, #tpu.memory_space<vmem>>, vector<1x8x384xf32>
    %150 = vector.shape_cast %149 : vector<1x8x384xf32> to vector<8x384xf32>
    %cst_40 = arith.constant dense<0.000000e+00> : vector<8x384xf32>
    %151 = tpu.matmul %143, %3, %cst_40 {dimension_numbers = #tpu.dot_dimension_numbers<[1], [0], [0], [1], [0, 0, 1, 1], [], []>} : vector<8x128xf32>, vector<128x384xf32>, vector<8x384xf32> -> vector<8x384xf32>
    %152 = vector.extract_strided_slice %150 {offsets = [0, 0], sizes = [8, 128], strides = [1, 1]} : vector<8x384xf32> to vector<8x128xf32>
    %153 = vector.extract_strided_slice %151 {offsets = [0, 0], sizes = [8, 128], strides = [1, 1]} : vector<8x384xf32> to vector<8x128xf32>
    %154 = arith.addf %152, %153 : vector<8x128xf32>
    %155 = arith.negf %154 : vector<8x128xf32>
    %156 = math.exp %155 : vector<8x128xf32>
    %cst_41 = arith.constant 1.000000e+00 : f32
    %157 = vector.broadcast %cst_41 : f32 to vector<8x128xf32>
    %158 = arith.addf %157, %156 : vector<8x128xf32>
    %159 = arith.divf %157, %158 : vector<8x128xf32>
    %160 = vector.extract_strided_slice %150 {offsets = [0, 128], sizes = [8, 128], strides = [1, 1]} : vector<8x384xf32> to vector<8x128xf32>
    %161 = vector.extract_strided_slice %151 {offsets = [0, 128], sizes = [8, 128], strides = [1, 1]} : vector<8x384xf32> to vector<8x128xf32>
    %162 = arith.addf %160, %161 : vector<8x128xf32>
    %163 = arith.negf %162 : vector<8x128xf32>
    %164 = math.exp %163 : vector<8x128xf32>
    %cst_42 = arith.constant 1.000000e+00 : f32
    %165 = vector.broadcast %cst_42 : f32 to vector<8x128xf32>
    %166 = arith.addf %165, %164 : vector<8x128xf32>
    %167 = arith.divf %165, %166 : vector<8x128xf32>
    %168 = vector.extract_strided_slice %150 {offsets = [0, 256], sizes = [8, 128], strides = [1, 1]} : vector<8x384xf32> to vector<8x128xf32>
    %169 = vector.extract_strided_slice %151 {offsets = [0, 256], sizes = [8, 128], strides = [1, 1]} : vector<8x384xf32> to vector<8x128xf32>
    %170 = arith.addf %169, %6 : vector<8x128xf32>
    %171 = arith.mulf %159, %170 : vector<8x128xf32>
    %172 = arith.addf %168, %171 : vector<8x128xf32>
    %173 = math.tanh %172 : vector<8x128xf32>
    %cst_43 = arith.constant 1.000000e+00 : f32
    %174 = vector.broadcast %cst_43 : f32 to vector<8x128xf32>
    %175 = arith.subf %174, %167 : vector<8x128xf32>
    %176 = arith.mulf %175, %173 : vector<8x128xf32>
    %177 = arith.mulf %167, %143 : vector<8x128xf32>
    %178 = arith.addf %176, %177 : vector<8x128xf32>
    %179 = arith.index_cast %c4_i32 : i32 to index
    %c0_44 = arith.constant 0 : index
    %c0_45 = arith.constant 0 : index
    %180 = vector.load %arg4[%179, %c0_44, %c0_45] : memref<8x8x128xf32, #tpu.memory_space<vmem>>, vector<1x8x128xf32>
    %181 = vector.shape_cast %180 : vector<1x8x128xf32> to vector<8x128xf32>
    %182 = vector.shape_cast %178 : vector<8x128xf32> to vector<1x8x128xf32>
    tpu.vector_store %arg4[%179, %c0_44, %c0_45], %182 {strides = array<i32>} : memref<8x8x128xf32, #tpu.memory_space<vmem>>, vector<1x8x128xf32>,
    %c5_i32 = arith.constant 5 : i32
    %183 = arith.index_cast %c5_i32 : i32 to index
    %c0_46 = arith.constant 0 : index
    %c0_47 = arith.constant 0 : index
    %184 = vector.load %arg1[%183, %c0_46, %c0_47] : memref<8x8x384xf32, #tpu.memory_space<vmem>>, vector<1x8x384xf32>
    %185 = vector.shape_cast %184 : vector<1x8x384xf32> to vector<8x384xf32>
    %cst_48 = arith.constant dense<0.000000e+00> : vector<8x384xf32>
    %186 = tpu.matmul %178, %3, %cst_48 {dimension_numbers = #tpu.dot_dimension_numbers<[1], [0], [0], [1], [0, 0, 1, 1], [], []>} : vector<8x128xf32>, vector<128x384xf32>, vector<8x384xf32> -> vector<8x384xf32>
    %187 = vector.extract_strided_slice %185 {offsets = [0, 0], sizes = [8, 128], strides = [1, 1]} : vector<8x384xf32> to vector<8x128xf32>
    %188 = vector.extract_strided_slice %186 {offsets = [0, 0], sizes = [8, 128], strides = [1, 1]} : vector<8x384xf32> to vector<8x128xf32>
    %189 = arith.addf %187, %188 : vector<8x128xf32>
    %190 = arith.negf %189 : vector<8x128xf32>
    %191 = math.exp %190 : vector<8x128xf32>
    %cst_49 = arith.constant 1.000000e+00 : f32
    %192 = vector.broadcast %cst_49 : f32 to vector<8x128xf32>
    %193 = arith.addf %192, %191 : vector<8x128xf32>
    %194 = arith.divf %192, %193 : vector<8x128xf32>
    %195 = vector.extract_strided_slice %185 {offsets = [0, 128], sizes = [8, 128], strides = [1, 1]} : vector<8x384xf32> to vector<8x128xf32>
    %196 = vector.extract_strided_slice %186 {offsets = [0, 128], sizes = [8, 128], strides = [1, 1]} : vector<8x384xf32> to vector<8x128xf32>
    %197 = arith.addf %195, %196 : vector<8x128xf32>
    %198 = arith.negf %197 : vector<8x128xf32>
    %199 = math.exp %198 : vector<8x128xf32>
    %cst_50 = arith.constant 1.000000e+00 : f32
    %200 = vector.broadcast %cst_50 : f32 to vector<8x128xf32>
    %201 = arith.addf %200, %199 : vector<8x128xf32>
    %202 = arith.divf %200, %201 : vector<8x128xf32>
    %203 = vector.extract_strided_slice %185 {offsets = [0, 256], sizes = [8, 128], strides = [1, 1]} : vector<8x384xf32> to vector<8x128xf32>
    %204 = vector.extract_strided_slice %186 {offsets = [0, 256], sizes = [8, 128], strides = [1, 1]} : vector<8x384xf32> to vector<8x128xf32>
    %205 = arith.addf %204, %6 : vector<8x128xf32>
    %206 = arith.mulf %194, %205 : vector<8x128xf32>
    %207 = arith.addf %203, %206 : vector<8x128xf32>
    %208 = math.tanh %207 : vector<8x128xf32>
    %cst_51 = arith.constant 1.000000e+00 : f32
    %209 = vector.broadcast %cst_51 : f32 to vector<8x128xf32>
    %210 = arith.subf %209, %202 : vector<8x128xf32>
    %211 = arith.mulf %210, %208 : vector<8x128xf32>
    %212 = arith.mulf %202, %178 : vector<8x128xf32>
    %213 = arith.addf %211, %212 : vector<8x128xf32>
    %214 = arith.index_cast %c5_i32 : i32 to index
    %c0_52 = arith.constant 0 : index
    %c0_53 = arith.constant 0 : index
    %215 = vector.load %arg4[%214, %c0_52, %c0_53] : memref<8x8x128xf32, #tpu.memory_space<vmem>>, vector<1x8x128xf32>
    %216 = vector.shape_cast %215 : vector<1x8x128xf32> to vector<8x128xf32>
    %217 = vector.shape_cast %213 : vector<8x128xf32> to vector<1x8x128xf32>
    tpu.vector_store %arg4[%214, %c0_52, %c0_53], %217 {strides = array<i32>} : memref<8x8x128xf32, #tpu.memory_space<vmem>>, vector<1x8x128xf32>,
    %c6_i32 = arith.constant 6 : i32
    %218 = arith.index_cast %c6_i32 : i32 to index
    %c0_54 = arith.constant 0 : index
    %c0_55 = arith.constant 0 : index
    %219 = vector.load %arg1[%218, %c0_54, %c0_55] : memref<8x8x384xf32, #tpu.memory_space<vmem>>, vector<1x8x384xf32>
    %220 = vector.shape_cast %219 : vector<1x8x384xf32> to vector<8x384xf32>
    %cst_56 = arith.constant dense<0.000000e+00> : vector<8x384xf32>
    %221 = tpu.matmul %213, %3, %cst_56 {dimension_numbers = #tpu.dot_dimension_numbers<[1], [0], [0], [1], [0, 0, 1, 1], [], []>} : vector<8x128xf32>, vector<128x384xf32>, vector<8x384xf32> -> vector<8x384xf32>
    %222 = vector.extract_strided_slice %220 {offsets = [0, 0], sizes = [8, 128], strides = [1, 1]} : vector<8x384xf32> to vector<8x128xf32>
    %223 = vector.extract_strided_slice %221 {offsets = [0, 0], sizes = [8, 128], strides = [1, 1]} : vector<8x384xf32> to vector<8x128xf32>
    %224 = arith.addf %222, %223 : vector<8x128xf32>
    %225 = arith.negf %224 : vector<8x128xf32>
    %226 = math.exp %225 : vector<8x128xf32>
    %cst_57 = arith.constant 1.000000e+00 : f32
    %227 = vector.broadcast %cst_57 : f32 to vector<8x128xf32>
    %228 = arith.addf %227, %226 : vector<8x128xf32>
    %229 = arith.divf %227, %228 : vector<8x128xf32>
    %230 = vector.extract_strided_slice %220 {offsets = [0, 128], sizes = [8, 128], strides = [1, 1]} : vector<8x384xf32> to vector<8x128xf32>
    %231 = vector.extract_strided_slice %221 {offsets = [0, 128], sizes = [8, 128], strides = [1, 1]} : vector<8x384xf32> to vector<8x128xf32>
    %232 = arith.addf %230, %231 : vector<8x128xf32>
    %233 = arith.negf %232 : vector<8x128xf32>
    %234 = math.exp %233 : vector<8x128xf32>
    %cst_58 = arith.constant 1.000000e+00 : f32
    %235 = vector.broadcast %cst_58 : f32 to vector<8x128xf32>
    %236 = arith.addf %235, %234 : vector<8x128xf32>
    %237 = arith.divf %235, %236 : vector<8x128xf32>
    %238 = vector.extract_strided_slice %220 {offsets = [0, 256], sizes = [8, 128], strides = [1, 1]} : vector<8x384xf32> to vector<8x128xf32>
    %239 = vector.extract_strided_slice %221 {offsets = [0, 256], sizes = [8, 128], strides = [1, 1]} : vector<8x384xf32> to vector<8x128xf32>
    %240 = arith.addf %239, %6 : vector<8x128xf32>
    %241 = arith.mulf %229, %240 : vector<8x128xf32>
    %242 = arith.addf %238, %241 : vector<8x128xf32>
    %243 = math.tanh %242 : vector<8x128xf32>
    %cst_59 = arith.constant 1.000000e+00 : f32
    %244 = vector.broadcast %cst_59 : f32 to vector<8x128xf32>
    %245 = arith.subf %244, %237 : vector<8x128xf32>
    %246 = arith.mulf %245, %243 : vector<8x128xf32>
    %247 = arith.mulf %237, %213 : vector<8x128xf32>
    %248 = arith.addf %246, %247 : vector<8x128xf32>
    %249 = arith.index_cast %c6_i32 : i32 to index
    %c0_60 = arith.constant 0 : index
    %c0_61 = arith.constant 0 : index
    %250 = vector.load %arg4[%249, %c0_60, %c0_61] : memref<8x8x128xf32, #tpu.memory_space<vmem>>, vector<1x8x128xf32>
    %251 = vector.shape_cast %250 : vector<1x8x128xf32> to vector<8x128xf32>
    %252 = vector.shape_cast %248 : vector<8x128xf32> to vector<1x8x128xf32>
    tpu.vector_store %arg4[%249, %c0_60, %c0_61], %252 {strides = array<i32>} : memref<8x8x128xf32, #tpu.memory_space<vmem>>, vector<1x8x128xf32>,
    %c7_i32 = arith.constant 7 : i32
    %253 = arith.index_cast %c7_i32 : i32 to index
    %c0_62 = arith.constant 0 : index
    %c0_63 = arith.constant 0 : index
    %254 = vector.load %arg1[%253, %c0_62, %c0_63] : memref<8x8x384xf32, #tpu.memory_space<vmem>>, vector<1x8x384xf32>
    %255 = vector.shape_cast %254 : vector<1x8x384xf32> to vector<8x384xf32>
    %cst_64 = arith.constant dense<0.000000e+00> : vector<8x384xf32>
    %256 = tpu.matmul %248, %3, %cst_64 {dimension_numbers = #tpu.dot_dimension_numbers<[1], [0], [0], [1], [0, 0, 1, 1], [], []>} : vector<8x128xf32>, vector<128x384xf32>, vector<8x384xf32> -> vector<8x384xf32>
    %257 = vector.extract_strided_slice %255 {offsets = [0, 0], sizes = [8, 128], strides = [1, 1]} : vector<8x384xf32> to vector<8x128xf32>
    %258 = vector.extract_strided_slice %256 {offsets = [0, 0], sizes = [8, 128], strides = [1, 1]} : vector<8x384xf32> to vector<8x128xf32>
    %259 = arith.addf %257, %258 : vector<8x128xf32>
    %260 = arith.negf %259 : vector<8x128xf32>
    %261 = math.exp %260 : vector<8x128xf32>
    %cst_65 = arith.constant 1.000000e+00 : f32
    %262 = vector.broadcast %cst_65 : f32 to vector<8x128xf32>
    %263 = arith.addf %262, %261 : vector<8x128xf32>
    %264 = arith.divf %262, %263 : vector<8x128xf32>
    %265 = vector.extract_strided_slice %255 {offsets = [0, 128], sizes = [8, 128], strides = [1, 1]} : vector<8x384xf32> to vector<8x128xf32>
    %266 = vector.extract_strided_slice %256 {offsets = [0, 128], sizes = [8, 128], strides = [1, 1]} : vector<8x384xf32> to vector<8x128xf32>
    %267 = arith.addf %265, %266 : vector<8x128xf32>
    %268 = arith.negf %267 : vector<8x128xf32>
    %269 = math.exp %268 : vector<8x128xf32>
    %cst_66 = arith.constant 1.000000e+00 : f32
    %270 = vector.broadcast %cst_66 : f32 to vector<8x128xf32>
    %271 = arith.addf %270, %269 : vector<8x128xf32>
    %272 = arith.divf %270, %271 : vector<8x128xf32>
    %273 = vector.extract_strided_slice %255 {offsets = [0, 256], sizes = [8, 128], strides = [1, 1]} : vector<8x384xf32> to vector<8x128xf32>
    %274 = vector.extract_strided_slice %256 {offsets = [0, 256], sizes = [8, 128], strides = [1, 1]} : vector<8x384xf32> to vector<8x128xf32>
    %275 = arith.addf %274, %6 : vector<8x128xf32>
    %276 = arith.mulf %264, %275 : vector<8x128xf32>
    %277 = arith.addf %273, %276 : vector<8x128xf32>
    %278 = math.tanh %277 : vector<8x128xf32>
    %cst_67 = arith.constant 1.000000e+00 : f32
    %279 = vector.broadcast %cst_67 : f32 to vector<8x128xf32>
    %280 = arith.subf %279, %272 : vector<8x128xf32>
    %281 = arith.mulf %280, %278 : vector<8x128xf32>
    %282 = arith.mulf %272, %248 : vector<8x128xf32>
    %283 = arith.addf %281, %282 : vector<8x128xf32>
    %284 = arith.index_cast %c7_i32 : i32 to index
    %c0_68 = arith.constant 0 : index
    %c0_69 = arith.constant 0 : index
    %285 = vector.load %arg4[%284, %c0_68, %c0_69] : memref<8x8x128xf32, #tpu.memory_space<vmem>>, vector<1x8x128xf32>
    %286 = vector.shape_cast %285 : vector<1x8x128xf32> to vector<8x128xf32>
    %287 = vector.shape_cast %283 : vector<8x128xf32> to vector<1x8x128xf32>
    tpu.vector_store %arg4[%284, %c0_68, %c0_69], %287 {strides = array<i32>} : memref<8x8x128xf32, #tpu.memory_space<vmem>>, vector<1x8x128xf32>,
    %c8_i32 = arith.constant 8 : i32
    %c0_70 = arith.constant 0 : index
    %c0_71 = arith.constant 0 : index
    %288 = vector.load %arg5[%c0_70, %c0_71] : memref<8x128xf32, #tpu.memory_space<vmem>>, vector<8x128xf32>
    tpu.vector_store %arg5[%c0_70, %c0_71], %283 {strides = array<i32>} : memref<8x128xf32, #tpu.memory_space<vmem>>, vector<8x128xf32>,
    return
  }
  func.func @transform_0(%arg0: i32) -> (i32, i32, i32) {
    %c0_i32 = arith.constant 0 : i32
    %c0_i32_0 = arith.constant 0 : i32
    %c0_i32_1 = arith.constant 0 : i32
    return %arg0, %c0_i32, %c0_i32_0 : i32, i32, i32
  }
  func.func @transform_1(%arg0: i32) -> (i32, i32) {
    %c0_i32 = arith.constant 0 : i32
    %c0_i32_0 = arith.constant 0 : i32
    %c0_i32_1 = arith.constant 0 : i32
    return %c0_i32, %c0_i32_0 : i32, i32
  }
  func.func @transform_2(%arg0: i32) -> (i32, i32) {
    %c0_i32 = arith.constant 0 : i32
    %c0_i32_0 = arith.constant 0 : i32
    %c0_i32_1 = arith.constant 0 : i32
    return %c0_i32, %c0_i32_0 : i32, i32
  }
  func.func @transform_3(%arg0: i32) -> (i32, i32, i32) {
    %c0_i32 = arith.constant 0 : i32
    %c0_i32_0 = arith.constant 0 : i32
    %c0_i32_1 = arith.constant 0 : i32
    return %arg0, %c0_i32, %c0_i32_0 : i32, i32, i32
  }
}

</mosaic_0001>

<bundles_post_ra>
// kernel: tpu_custom_call.1
= control target key start
LH: loop header
LB: loop body
LE: loop exit
PB: predicated region body
PF: predicated region fallthrough
CT: control target
= control target key end

     0   :  { %8 = vsyncpa [#allocation4], 0  ;;  %s1838_s0 = inlined_call_operand.hbm [shape: f32[8,8,384], index: 0, kind: input, shape index: {}]   ;;  %s1839_s1 = inlined_call_operand.hbm [shape: f32[128,384], index: 1, kind: input, shape index: {}]   ;;  %s1840_s2 = inlined_call_operand.vmem [shape: f32[1,128], index: 2, kind: input, shape index: {}]   ;;  %s1841_s3 = inlined_call_operand.hbm [shape: f32[8,8,128], index: 3, kind: output, shape index: {}]  }
   0x1   :  { %9 = vsyncpa [#allocation7], 0 }
   0x2   :  { %10 = vsyncpa [#allocation5], 0  ;;  %s15_s14 = sshll.u32 %s1838_s0, 4  ;;  %s1268_s15 = smov [#allocation3]   ;;  %s16_s14 = int_to_ptr.hbm [resolvable:$true] %s15_s14 }
   0x3   :  { %s17_s16 = sshll.u32 %s1268_s15, 4  ;;  %s28_s19 = sshll.u32 %s1839_s1, 4  ;;  %s18_s16 = int_to_ptr.vmem [resolvable:$true] %s17_s16  ;;  %s29_s19 = int_to_ptr.hbm [resolvable:$true] %s28_s19 }
   0x4   :  { %s1269_s20 = smov 384   ;;  %s1270_s21 = smov 24  }
   0x5   :  { %23 = dma.hbm_to_vmem [thread:$0]  %s16_s14, 3072, %s18_s16, [#allocation4], %s1269_s20, %s1269_s20, %s1270_s21  }
   0x6   :  { %s1271_s22 = smov [#allocation6]  }
   0x7   :  { %s30_s23 = sshll.u32 %s1271_s22, 4  ;;  %s31_s23 = int_to_ptr.vmem [resolvable:$true] %s30_s23 }
   0x8   :  { %36 = dma.hbm_to_vmem [thread:$0]  %s29_s19, 6144, %s31_s23, [#allocation7], %s1269_s20, %s1269_s20, %s1270_s21  }
   0x9   :  { %1262 = dma.done.wait [#allocation4], 3072  }
   0xa   :  { %1263 = vsyncadd [#allocation4], 4294964224 }
   0xb   :  { %1264 = dma.done.wait [#allocation7], 6144  }
   0xc   :  { %1265 = vsyncadd [#allocation7], 4294961152  ;;  %v1302_v0 = vld [vmem:[#allocation6 + $0x168] sm:$0xff]  ;;  %v1304_v1 = vld [vmem:[#allocation6 + $0x170] sm:$0xff]  ;;  %v1272_v44 = vmov 0.0   ;;  %s1022_s29 = sshll.u32 %s1841_s3, 4  ;;  %s1023_s29 = int_to_ptr.hbm [resolvable:$true] %s1022_s29 }
   0xd   :  { %v1306_v2 = vld [vmem:[#allocation6 + $0x150] sm:$0xff]  ;;  %108 = vmatpush.msra.mxu0 %v1302_v0  ;;  %128 = vmatpush.msra.mxu1 %v1304_v1  ;;  %v1310_v3 = vld [vmem:[#allocation6 + $0x158] sm:$0xff]  ;;  %v1314_v5 = vld [vmem:[#allocation6 + $0x140] sm:$0xff]  ;;  %s1274_s30 = smov 128   ;;  %s1275_s4 = smov 8  }
   0xe   :  { %v1312_v4 = vld [vmem:[#allocation6 + $0x138] sm:$0xff]  ;;  %221 = vmatpush.msra.mxu3 %v1302_v0  ;;  %v1319_v6 = vld [vmem:[#allocation6 + $0x120] sm:$0xff]  ;;  %v1321_v7 = vld [vmem:[#allocation6 + $0x128] sm:$0xff] }
   0xf   :  { %109 = vmatpush.msra.mxu0 %v1306_v2  ;;  %129 = vmatpush.msra.mxu1 %v1310_v3  ;;  %v1326_v8 = vld [vmem:[#allocation6 + $0x108] sm:$0xff]  ;;  %v1328_v9 = vld [vmem:[#allocation6 + $0x110] sm:$0xff]  ;;  %v1335_v11 = vld [vmem:[#allocation6 + $0xf8] sm:$0xff] }
  0x10   :  { %222 = vmatpush.msra.mxu3 %v1306_v2  ;;  %v1333_v10 = vld [vmem:[#allocation6 + $0xf0] sm:$0xff]  ;;  %v1337_v12 = vld [vmem:[#allocation6 + $0x178] sm:$0xff]  ;;  %v1342_v13 = vld [vmem:[#allocation6 + $0x160] sm:$0xff] }
  0x11   :  { %110 = vmatpush.msra.mxu0 %v1312_v4  ;;  %130 = vmatpush.msra.mxu1 %v1314_v5  ;;  %v1344_v14 = vld [vmem:[#allocation6 + $0xd8] sm:$0xff]  ;;  %v1346_v15 = vld [vmem:[#allocation6 + $0xe0] sm:$0xff]  ;;  %v1352_v16 = vld [vmem:[#allocation6 + $0x148] sm:$0xff] }
  0x12   :  { %223 = vmatpush.msra.mxu3 %v1312_v4  ;;  %148 = vmatpush.msra.mxu2 %v1337_v12  ;;  %v1354_v17 = vld [vmem:[#allocation6 + $0xc0] sm:$0xff]  ;;  %v1356_v18 = vld [vmem:[#allocation6 + $0xc8] sm:$0xff]  ;;  %v1362_v19 = vld [vmem:[#allocation6 + $0x130] sm:$0xff] }
  0x13   :  { %111 = vmatpush.msra.mxu0 %v1319_v6  ;;  %131 = vmatpush.msra.mxu1 %v1321_v7  ;;  %v1364_v20 = vld [vmem:[#allocation6 + $0xa8] sm:$0xff]  ;;  %v1366_v21 = vld [vmem:[#allocation6 + $0xb0] sm:$0xff]  ;;  %v1372_v22 = vld [vmem:[#allocation6 + $0x118] sm:$0xff] }
  0x14   :  { %224 = vmatpush.msra.mxu3 %v1319_v6  ;;  %149 = vmatpush.msra.mxu2 %v1342_v13  ;;  %v1374_v23 = vld [vmem:[#allocation6 + $0x90] sm:$0xff]  ;;  %v1376_v24 = vld [vmem:[#allocation6 + $0x98] sm:$0xff]  ;;  %v1382_v25 = vld [vmem:[#allocation6 + $0x100] sm:$0xff] }
  0x15   :  { %112 = vmatpush.msra.mxu0 %v1326_v8  ;;  %132 = vmatpush.msra.mxu1 %v1328_v9  ;;  %v1384_v26 = vld [vmem:[#allocation6 + $0x78] sm:$0xff]  ;;  %v1386_v27 = vld [vmem:[#allocation6 + $0x80] sm:$0xff]  ;;  %v1392_v28 = vld [vmem:[#allocation6 + $0xe8] sm:$0xff] }
  0x16   :  { %225 = vmatpush.msra.mxu3 %v1326_v8  ;;  %150 = vmatpush.msra.mxu2 %v1352_v16  ;;  %v1394_v29 = vld [vmem:[#allocation6 + $0x60] sm:$0xff]  ;;  %v1396_v30 = vld [vmem:[#allocation6 + $0x68] sm:$0xff]  ;;  %v1402_v31 = vld [vmem:[#allocation6 + $0xd0] sm:$0xff] }
  0x17   :  { %113 = vmatpush.msra.mxu0 %v1333_v10  ;;  %133 = vmatpush.msra.mxu1 %v1335_v11  ;;  %v1404_v32 = vld [vmem:[#allocation6 + $0x48] sm:$0xff]  ;;  %v1406_v33 = vld [vmem:[#allocation6 + $0x50] sm:$0xff]  ;;  %v1412_v34 = vld [vmem:[#allocation6 + $0xb8] sm:$0xff] }
  0x18   :  { %226 = vmatpush.msra.mxu3 %v1333_v10  ;;  %151 = vmatpush.msra.mxu2 %v1362_v19  ;;  %v1414_v35 = vld [vmem:[#allocation6 + $0x30] sm:$0xff]  ;;  %v1416_v36 = vld [vmem:[#allocation6 + $0x38] sm:$0xff]  ;;  %v1422_v37 = vld [vmem:[#allocation6 + $0xa0] sm:$0xff] }
  0x19   :  { %114 = vmatpush.msra.mxu0 %v1344_v14  ;;  %134 = vmatpush.msra.mxu1 %v1346_v15  ;;  %1858 = vst [vmem:[#allocation12_spill] sm:$0xff] %v1414_v35  ;;  %v1424_v38 = vld [vmem:[#allocation6 + $0x18] sm:$0xff]  ;;  %v1426_v39 = vld [vmem:[#allocation6 + $0x20] sm:$0xff]  ;;  %v1432_v40 = vld [vmem:[#allocation6 + $0x88] sm:$0xff] }
  0x1a   :  { %227 = vmatpush.msra.mxu3 %v1344_v14  ;;  %152 = vmatpush.msra.mxu2 %v1372_v22  ;;  %1859 = vst [vmem:[#allocation13_spill] sm:$0xff] %v1416_v36  ;;  %v1434_v41 = vld [vmem:[#allocation6] sm:$0xff]  ;;  %v1436_v42 = vld [vmem:[#allocation6 + $0x8] sm:$0xff]  ;;  %v1443_v43 = vld [vmem:[#allocation6 + $0x70] sm:$0xff] }
  0x1b   :  { %115 = vmatpush.msra.mxu0 %v1354_v17  ;;  %135 = vmatpush.msra.mxu1 %v1356_v18  ;;  %1860 = vst [vmem:[#allocation14_spill] sm:$0xff] %v1424_v38  ;;  %v1448_v45 = vld [vmem:[#allocation6 + $0x58] sm:$0xff]  ;;  %v1452_v46 = vld [vmem:[#allocation6 + $0x40] sm:$0xff]  ;;  %v1458_v47 = vld [vmem:[#allocation6 + $0x28] sm:$0xff] }
  0x1c   :  { %228 = vmatpush.msra.mxu3 %v1354_v17  ;;  %153 = vmatpush.msra.mxu2 %v1382_v25  ;;  %1861 = vst [vmem:[#allocation15_spill] sm:$0xff] %v1426_v39  ;;  %v1464_v48 = vld [vmem:[#allocation6 + $0x10] sm:$0xff]  ;;  %v105_v49 = vld [vmem:[#allocation3] sm:$0xff]  ;;  %v106_v50 = vld [vmem:[#allocation3 + $0x8] sm:$0xff] }
  0x1d   :  { %116 = vmatpush.msra.mxu0 %v1364_v20  ;;  %136 = vmatpush.msra.mxu1 %v1366_v21  ;;  %1862 = vst [vmem:[#allocation16_spill] sm:$0xff] %v1434_v41 }
  0x1e   :  { %229 = vmatpush.msra.mxu3 %v1364_v20  ;;  %154 = vmatpush.msra.mxu2 %v1392_v28  ;;  %1863 = vst [vmem:[#allocation17_spill] sm:$0xff] %v1436_v42 }
  0x1f   :  { %117 = vmatpush.msra.mxu0 %v1374_v23  ;;  %137 = vmatpush.msra.mxu1 %v1376_v24  ;;  %1864 = vst [vmem:[#allocation18_spill] sm:$0xff] %v1458_v47 }
  0x20   :  { %230 = vmatpush.msra.mxu3 %v1374_v23  ;;  %155 = vmatpush.msra.mxu2 %v1402_v31  ;;  %1865 = vst [vmem:[#allocation19_spill] sm:$0xff] %v1464_v48 }
  0x21   :  { %118 = vmatpush.msra.mxu0 %v1384_v26  ;;  %138 = vmatpush.msra.mxu1 %v1386_v27 }
  0x22   :  { %231 = vmatpush.msra.mxu3 %v1384_v26  ;;  %156 = vmatpush.msra.mxu2 %v1412_v34 }
  0x23   :  { %119 = vmatpush.msra.mxu0 %v1394_v29  ;;  %139 = vmatpush.msra.mxu1 %v1396_v30 }
  0x24   :  { %232 = vmatpush.msra.mxu3 %v1394_v29  ;;  %157 = vmatpush.msra.mxu2 %v1422_v37 }
  0x25   :  { %120 = vmatpush.msra.mxu0 %v1404_v32  ;;  %140 = vmatpush.msra.mxu1 %v1406_v33 }
  0x26   :  { %233 = vmatpush.msra.mxu3 %v1404_v32  ;;  %158 = vmatpush.msra.mxu2 %v1432_v40 }
  0x27   :  { %121 = vmatpush.msra.mxu0 %v1414_v35  ;;  %141 = vmatpush.msra.mxu1 %v1416_v36 }
  0x28   :  { %234 = vmatpush.msra.mxu3 %v1414_v35  ;;  %159 = vmatpush.msra.mxu2 %v1443_v43 }
  0x29   :  { %122 = vmatpush.msra.mxu0 %v1424_v38  ;;  %142 = vmatpush.msra.mxu1 %v1426_v39 }
  0x2a   :  { %235 = vmatpush.msra.mxu3 %v1424_v38  ;;  %160 = vmatpush.msra.mxu2 %v1448_v45 }
  0x2b   :  { %123 = vmatpush.msra.mxu0 %v1434_v41  ;;  %143 = vmatpush.msra.mxu1 %v1436_v42 }
  0x2c   :  { %124 = vmatmul.f32.vlgmr.msra.gmra.mxu0 %v1272_v44  ;;  %144 = vmatmul.f32.vlgmr.msra.gmra.mxu1 %v1272_v44 }
  0x2d   :  { %241 = vmatpush.msrb.mxu0 %v1304_v1  ;;  %261 = vmatpush.msrb.mxu1 %v1337_v12 }
  0x2e   :  { %236 = vmatpush.msra.mxu3 %v1434_v41  ;;  %161 = vmatpush.msra.mxu2 %v1452_v46 }
  0x2f   :  { %242 = vmatpush.msrb.mxu0 %v1310_v3  ;;  %262 = vmatpush.msrb.mxu1 %v1342_v13 }
  0x30   :  { %355 = vmatpush.msrb.mxu3 %v1304_v1  ;;  %162 = vmatpush.msra.mxu2 %v1458_v47 }
  0x31   :  { %243 = vmatpush.msrb.mxu0 %v1314_v5  ;;  %263 = vmatpush.msrb.mxu1 %v1352_v16 }
  0x32   :  { %356 = vmatpush.msrb.mxu3 %v1310_v3  ;;  %163 = vmatpush.msra.mxu2 %v1464_v48 }
  0x33   :  { %244 = vmatpush.msrb.mxu0 %v1321_v7  ;;  %264 = vmatpush.msrb.mxu1 %v1362_v19 }
  0x34   :  { %357 = vmatpush.msrb.mxu3 %v1314_v5  ;;  %164 = vmatmul.f32.vlgmr.msra.gmra.mxu2 %v1272_v44 }
  0x35   :  { %245 = vmatpush.msrb.mxu0 %v1328_v9  ;;  %265 = vmatpush.msrb.mxu1 %v1372_v22 }
  0x36   :  { %335 = vmatpush.msrb.mxu2 %v1302_v0  ;;  %358 = vmatpush.msrb.mxu3 %v1321_v7 }
  0x37   :  { %246 = vmatpush.msrb.mxu0 %v1335_v11  ;;  %266 = vmatpush.msrb.mxu1 %v1382_v25 }
  0x38   :  { %336 = vmatpush.msrb.mxu2 %v1306_v2  ;;  %359 = vmatpush.msrb.mxu3 %v1328_v9 }
  0x39   :  { %247 = vmatpush.msrb.mxu0 %v1346_v15  ;;  %267 = vmatpush.msrb.mxu1 %v1392_v28 }
  0x3a   :  { %337 = vmatpush.msrb.mxu2 %v1312_v4  ;;  %360 = vmatpush.msrb.mxu3 %v1335_v11 }
  0x3b   :  { %248 = vmatpush.msrb.mxu0 %v1356_v18  ;;  %268 = vmatpush.msrb.mxu1 %v1402_v31 }
  0x3c   :  { %338 = vmatpush.msrb.mxu2 %v1319_v6  ;;  %361 = vmatpush.msrb.mxu3 %v1346_v15 }
  0x3d   :  { %249 = vmatpush.msrb.mxu0 %v1366_v21  ;;  %269 = vmatpush.msrb.mxu1 %v1412_v34 }
  0x3e   :  { %339 = vmatpush.msrb.mxu2 %v1326_v8  ;;  %362 = vmatpush.msrb.mxu3 %v1356_v18 }
  0x3f   :  { %250 = vmatpush.msrb.mxu0 %v1376_v24  ;;  %270 = vmatpush.msrb.mxu1 %v1422_v37 }
  0x40   :  { %340 = vmatpush.msrb.mxu2 %v1333_v10  ;;  %363 = vmatpush.msrb.mxu3 %v1366_v21 }
  0x41   :  { %251 = vmatpush.msrb.mxu0 %v1386_v27  ;;  %271 = vmatpush.msrb.mxu1 %v1432_v40 }
  0x42   :  { %341 = vmatpush.msrb.mxu2 %v1344_v14  ;;  %364 = vmatpush.msrb.mxu3 %v1376_v24 }
  0x43   :  { %252 = vmatpush.msrb.mxu0 %v1396_v30  ;;  %272 = vmatpush.msrb.mxu1 %v1443_v43 }
  0x44   :  { %342 = vmatpush.msrb.mxu2 %v1354_v17  ;;  %365 = vmatpush.msrb.mxu3 %v1386_v27 }
  0x45   :  { %253 = vmatpush.msrb.mxu0 %v1406_v33  ;;  %273 = vmatpush.msrb.mxu1 %v1448_v45 }
  0x46   :  { %343 = vmatpush.msrb.mxu2 %v1364_v20  ;;  %366 = vmatpush.msrb.mxu3 %v1396_v30 }
  0x47   :  { %254 = vmatpush.msrb.mxu0 %v1416_v36  ;;  %274 = vmatpush.msrb.mxu1 %v1452_v46 }
  0x48   :  { %344 = vmatpush.msrb.mxu2 %v1374_v23  ;;  %367 = vmatpush.msrb.mxu3 %v1406_v33 }
  0x49   :  { %255 = vmatpush.msrb.mxu0 %v1426_v39  ;;  %275 = vmatpush.msrb.mxu1 %v1458_v47 }
  0x4a   :  { %345 = vmatpush.msrb.mxu2 %v1384_v26  ;;  %368 = vmatpush.msrb.mxu3 %v1416_v36 }
  0x4b   :  { %256 = vmatpush.msrb.mxu0 %v1436_v42  ;;  %276 = vmatpush.msrb.mxu1 %v1464_v48 }
  0x4c   :  { %346 = vmatpush.msrb.mxu2 %v1394_v29  ;;  %369 = vmatpush.msrb.mxu3 %v1426_v39 }
  0x4d   :  { %375 = vmatpush.msra.mxu0 %v1337_v12  ;;  %449 = vmatpush.msra.mxu1 %v1302_v0 }
  0x4e   :  { %347 = vmatpush.msrb.mxu2 %v1404_v32  ;;  %370 = vmatpush.msrb.mxu3 %v1436_v42 }
  0x4f   :  { %376 = vmatpush.msra.mxu0 %v1342_v13  ;;  %450 = vmatpush.msra.mxu1 %v1306_v2 }
  0x50   :  { %348 = vmatpush.msrb.mxu2 %v1414_v35 }
  0x51   :  { %377 = vmatpush.msra.mxu0 %v1352_v16  ;;  %451 = vmatpush.msra.mxu1 %v1312_v4 }
  0x52   :  { %349 = vmatpush.msrb.mxu2 %v1424_v38 }
  0x53   :  { %378 = vmatpush.msra.mxu0 %v1362_v19  ;;  %452 = vmatpush.msra.mxu1 %v1319_v6 }
  0x54   :  { %350 = vmatpush.msrb.mxu2 %v1434_v41 }
  0x55   :  { %379 = vmatpush.msra.mxu0 %v1372_v22  ;;  %453 = vmatpush.msra.mxu1 %v1326_v8 }
  0x56   :  { %469 = vmatpush.msra.mxu2 %v1304_v1 }
  0x57   :  { %380 = vmatpush.msra.mxu0 %v1382_v25  ;;  %454 = vmatpush.msra.mxu1 %v1333_v10 }
  0x58   :  { %470 = vmatpush.msra.mxu2 %v1310_v3 }
  0x59   :  { %381 = vmatpush.msra.mxu0 %v1392_v28  ;;  %455 = vmatpush.msra.mxu1 %v1344_v14 }
  0x5a   :  { %471 = vmatpush.msra.mxu2 %v1314_v5 }
  0x5b   :  { %382 = vmatpush.msra.mxu0 %v1402_v31  ;;  %456 = vmatpush.msra.mxu1 %v1354_v17 }
  0x5c   :  { %472 = vmatpush.msra.mxu2 %v1321_v7 }
  0x5d   :  { %383 = vmatpush.msra.mxu0 %v1412_v34  ;;  %457 = vmatpush.msra.mxu1 %v1364_v20 }
  0x5e   :  { %473 = vmatpush.msra.mxu2 %v1328_v9 }
  0x5f   :  { %384 = vmatpush.msra.mxu0 %v1422_v37  ;;  %458 = vmatpush.msra.mxu1 %v1374_v23 }
  0x60   :  { %474 = vmatpush.msra.mxu2 %v1335_v11 }
  0x61   :  { %385 = vmatpush.msra.mxu0 %v1432_v40  ;;  %459 = vmatpush.msra.mxu1 %v1384_v26 }
  0x62   :  { %475 = vmatpush.msra.mxu2 %v1346_v15 }
  0x63   :  { %386 = vmatpush.msra.mxu0 %v1443_v43  ;;  %460 = vmatpush.msra.mxu1 %v1394_v29 }
  0x64   :  { %476 = vmatpush.msra.mxu2 %v1356_v18 }
  0x65   :  { %387 = vmatpush.msra.mxu0 %v1448_v45  ;;  %461 = vmatpush.msra.mxu1 %v1404_v32 }
  0x66   :  { %477 = vmatpush.msra.mxu2 %v1366_v21 }
  0x67   :  { %388 = vmatpush.msra.mxu0 %v1452_v46  ;;  %462 = vmatpush.msra.mxu1 %v1414_v35 }
  0x68   :  { %478 = vmatpush.msra.mxu2 %v1376_v24 }
  0x69   :  { %389 = vmatpush.msra.mxu0 %v1458_v47  ;;  %463 = vmatpush.msra.mxu1 %v1424_v38 }
  0x6a   :  { %479 = vmatpush.msra.mxu2 %v1386_v27 }
  0x6b   :  { %390 = vmatpush.msra.mxu0 %v1464_v48  ;;  %464 = vmatpush.msra.mxu1 %v1434_v41 }
  0x6c   :  { %480 = vmatpush.msra.mxu2 %v1396_v30 }
  0x6e   :  { %481 = vmatpush.msra.mxu2 %v1406_v33 }
  0x70   :  { %482 = vmatpush.msra.mxu2 %v1416_v36 }
  0x72   :  { %483 = vmatpush.msra.mxu2 %v1426_v39  ;;  %v107_v39 = vld [vmem:[#allocation3 + $0x10] sm:$0xff] }
  0x74   :  { %484 = vmatpush.msra.mxu2 %v1436_v42  ;;  %v1577_v42 = vld [vmem:[%s1840_s2] ss:$0 sm:$0xff] }
  0xa9   :  { %v125_v51 = vpop.f32.mrf.mxu0  ;;  %v145_v52 = vpop.f32.mrf.mxu1 }
  0xaa   :  { %v168_v53 = vadd.f32 %v125_v51, %v105_v49  ;;  %v188_v54 = vadd.f32 %v145_v52, %v106_v50 }
  0xac   :  { %v1036_v55 = vmul.f32 -1.442695, %v168_v53  ;;  %v1037_v56 = vmul.f32 -1.442695, %v188_v54 }
  0xae   :  { %1061 = vpow2.f32 %v1036_v55 }
  0xaf   :  { %1063 = vpow2.f32 %v1037_v56 }
  0xb4   :  { %v1062_v57 = vpop.eup %1061 }
  0xb5   :  { %v1064_v58 = vpop.eup %1063  ;;  %v172_v59 = vadd.f32 1.0, %v1062_v57 }
  0xb6   :  { %v192_v60 = vadd.f32 1.0, %v1064_v58 }
  0xb7   :  { %1065 = vrcp.f32 %v172_v59  ;;  %v165_v51 = vpop.f32.mrf.mxu2  ;;  %v184_v52 = vand.u32 2147483648, %v172_v59  ;;  %v182_v54 = vand.u32 2147483647, %v172_v59  ;;  %vm178_vm1 = vweird.f32 %v172_v59 }
  0xb8   :  { %1067 = vrcp.f32 %v192_v60  ;;  %v208_v57 = vadd.f32 %v1577_v42, %v165_v51  ;;  %vm198_vm4 = vweird.f32 %v192_v60  ;;  %v202_v47 = vand.u32 2147483647, %v192_v60 }
  0xb9   :  { %v185_v58 = vor.u32 1.1754944e-38, %v184_v52  ;;  %vm183_vm3 = vcmp.eq.f32.partialorder %v182_v54, 8.507059e+37 }
  0xba   :  { %vm203_vm7 = vcmp.eq.f32.partialorder %v202_v47, 8.507059e+37  ;;  %v1870_v47 = vld [vmem:[#allocation19_spill] sm:$0xff] }
  0xbd   :  { %v1066_v61 = vpop.eup %1065 }
  0xbe   :  { %v1068_v62 = vpop.eup %1067  ;;  %v174_v63 = vmul.f32 %v1066_v61, %v172_v59  ;;  %vm179_vm0 = vweird.f32 %v1066_v61 }
  0xbf   :  { %v194_v44 = vmul.f32 %v1068_v62, %v192_v60  ;;  %vm180_vm2 = vmor %vm178_vm1, %vm179_vm0  ;;  %vm199_vm5 = vweird.f32 %v1068_v62 }
  0xc0   :  { %v175_v49 = vsub.f32 1.0, %v174_v63  ;;  %vm200_vm6 = vmor %vm198_vm4, %vm199_vm5 }
  0xc1   :  { %v195_v50 = vsub.f32 1.0, %v194_v44  ;;  %v204_v44 = vand.u32 2147483648, %v192_v60  ;;  %v1872_v60 = vld [vmem:[#allocation17_spill] sm:$0xff] }
  0xc2   :  { %v176_v53 = vmul.f32 %v1066_v61, %v175_v49 }
  0xc3   :  { %v196_v55 = vmul.f32 %v1068_v62, %v195_v50  ;;  %v205_v50 = vor.u32 1.1754944e-38, %v204_v44 }
  0xc4   :  { %v177_v56 = vadd.f32 %v1066_v61, %v176_v53 }
  0xc5   :  { %v197_v48 = vadd.f32 %v1068_v62, %v196_v55 }
  0xc6   :  { %v181_v41 = vsel %vm180_vm2, %v1066_v61, %v177_v56 }
  0xc7   :  { %v186_v63 = vsel %vm183_vm3, %v185_v58, %v181_v41  ;;  %v201_v36 = vsel %vm200_vm6, %v1068_v62, %v197_v48  ;;  %v1869_v41 = vld [vmem:[#allocation15_spill] sm:$0xff]  ;;  %v1871_v48 = vld [vmem:[#allocation16_spill] sm:$0xff] }
  0xc8   :  { %v209_v38 = vmul.f32 %v208_v57, %v186_v63  ;;  %v206_v59 = vsel %vm203_vm7, %v205_v50, %v201_v36  ;;  %v1866_v36 = vld [vmem:[#allocation13_spill] sm:$0xff]  ;;  %v219_v62 = vld [vmem:[#allocation3 + $0x20] sm:$0xff]  ;;  %v218_v58 = vld [vmem:[#allocation3 + $0x18] sm:$0xff] }
  0xc9   :  { %v212_v51 = vsub.f32 1.0, %v206_v59  ;;  %v214_v61 = vmul.f32 0.0, %v206_v59 }
  0xca   :  { %v210_v49 = vadd.f32 %v209_v38, %v107_v39  ;;  %v1867_v38 = vld [vmem:[#allocation18_spill] sm:$0xff] }
  0xcb   :  { %v1868_v39 = vld [vmem:[#allocation14_spill] sm:$0xff] }
  0xcc   :  { %1069 = vtanh.f32 %v210_v49 }
  0xd2   :  { %v1070_v53 = vpop.eup %1069 }
  0xd3   :  { %v213_v52 = vmul.f32 %v1070_v53, %v212_v51 }
  0xd5   :  { %v1580_v54 = vadd.f32 %v214_v61, %v213_v52 }
  0xd7   :  { %216 = vst [vmem:[#allocation8] sm:$0xff] %v1580_v54  ;;  %237 = vmatmul.f32.vlgmr.msra.gmra.mxu3 %v1580_v54  ;;  %257 = vmatmul.f32.vlgmr.msrb.gmra.mxu0 %v1580_v54 }
  0xd8   :  { %277 = vmatmul.f32.vlgmr.msrb.gmra.mxu1 %v1580_v54  ;;  %489 = vmatpush.msra.mxu3 %v1337_v12 }
  0xd9   :  { %563 = vmatpush.msrb.mxu0 %v1302_v0  ;;  %583 = vmatpush.msrb.mxu1 %v1304_v1 }
  0xda   :  { %490 = vmatpush.msra.mxu3 %v1342_v13 }
  0xdb   :  { %564 = vmatpush.msrb.mxu0 %v1306_v2  ;;  %584 = vmatpush.msrb.mxu1 %v1310_v3 }
  0xdc   :  { %491 = vmatpush.msra.mxu3 %v1352_v16 }
  0xdd   :  { %565 = vmatpush.msrb.mxu0 %v1312_v4  ;;  %585 = vmatpush.msrb.mxu1 %v1314_v5 }
  0xde   :  { %492 = vmatpush.msra.mxu3 %v1362_v19 }
  0xdf   :  { %566 = vmatpush.msrb.mxu0 %v1319_v6  ;;  %586 = vmatpush.msrb.mxu1 %v1321_v7 }
  0xe0   :  { %493 = vmatpush.msra.mxu3 %v1372_v22 }
  0xe1   :  { %567 = vmatpush.msrb.mxu0 %v1326_v8  ;;  %587 = vmatpush.msrb.mxu1 %v1328_v9 }
  0xe2   :  { %494 = vmatpush.msra.mxu3 %v1382_v25 }
  0xe3   :  { %568 = vmatpush.msrb.mxu0 %v1333_v10  ;;  %588 = vmatpush.msrb.mxu1 %v1335_v11 }
  0xe4   :  { %495 = vmatpush.msra.mxu3 %v1392_v28 }
  0xe5   :  { %569 = vmatpush.msrb.mxu0 %v1344_v14  ;;  %589 = vmatpush.msrb.mxu1 %v1346_v15 }
  0xe6   :  { %496 = vmatpush.msra.mxu3 %v1402_v31 }
  0xe7   :  { %570 = vmatpush.msrb.mxu0 %v1354_v17  ;;  %590 = vmatpush.msrb.mxu1 %v1356_v18 }
  0xe8   :  { %497 = vmatpush.msra.mxu3 %v1412_v34 }
  0xe9   :  { %571 = vmatpush.msrb.mxu0 %v1364_v20  ;;  %591 = vmatpush.msrb.mxu1 %v1366_v21 }
  0xea   :  { %498 = vmatpush.msra.mxu3 %v1422_v37 }
  0xeb   :  { %572 = vmatpush.msrb.mxu0 %v1374_v23  ;;  %592 = vmatpush.msrb.mxu1 %v1376_v24 }
  0xec   :  { %499 = vmatpush.msra.mxu3 %v1432_v40 }
  0xed   :  { %573 = vmatpush.msrb.mxu0 %v1384_v26  ;;  %593 = vmatpush.msrb.mxu1 %v1386_v27 }
  0xee   :  { %500 = vmatpush.msra.mxu3 %v1443_v43 }
  0xef   :  { %574 = vmatpush.msrb.mxu0 %v1394_v29  ;;  %594 = vmatpush.msrb.mxu1 %v1396_v30 }
  0xf0   :  { %501 = vmatpush.msra.mxu3 %v1448_v45 }
  0xf1   :  { %575 = vmatpush.msrb.mxu0 %v1404_v32  ;;  %595 = vmatpush.msrb.mxu1 %v1406_v33 }
  0xf2   :  { %502 = vmatpush.msra.mxu3 %v1452_v46 }
  0xf3   :  { %576 = vmatpush.msrb.mxu0 %v1414_v35  ;;  %596 = vmatpush.msrb.mxu1 %v1866_v36 }
  0xf4   :  { %503 = vmatpush.msra.mxu3 %v1867_v38  ;;  %v220_v38 = vld [vmem:[#allocation3 + $0x28] sm:$0xff] }
  0xf5   :  { %577 = vmatpush.msrb.mxu0 %v1868_v39  ;;  %597 = vmatpush.msrb.mxu1 %v1869_v41 }
  0xf6   :  { %504 = vmatpush.msra.mxu3 %v1870_v47 }
  0xf7   :  { %578 = vmatpush.msrb.mxu0 %v1871_v48  ;;  %598 = vmatpush.msrb.mxu1 %v1872_v60 }
 0x154   :  { %v258_v55 = vpop.f32.mrf.mxu0 }
 0x155   :  { %v301_v56 = vadd.f32 %v258_v55, %v219_v62 }
 0x157   :  { %v1039_v57 = vmul.f32 -1.442695, %v301_v56 }
 0x159   :  { %1071 = vpow2.f32 %v1039_v57 }
 0x15a   :  { %v238_v63 = vpop.f32.mrf.mxu3 }
 0x15b   :  { %v281_v44 = vadd.f32 %v238_v63, %v218_v58  ;;  %v278_v58 = vpop.f32.mrf.mxu1 }
 0x15d   :  { %v1038_v49 = vmul.f32 -1.442695, %v281_v44 }
 0x15f   :  { %v1072_v50 = vpop.eup %1071  ;;  %1073 = vpow2.f32 %v1038_v49  ;;  %v321_v49 = vadd.f32 %v1577_v42, %v278_v58 }
 0x160   :  { %v305_v59 = vadd.f32 1.0, %v1072_v50 }
 0x162   :  { %1075 = vrcp.f32 %v305_v59  ;;  %vm311_vm13 = vweird.f32 %v305_v59 }
 0x165   :  { %v1074_v51 = vpop.eup %1073 }
 0x166   :  { %v285_v53 = vadd.f32 1.0, %v1074_v51 }
 0x168   :  { %1077 = vrcp.f32 %v285_v53  ;;  %v1076_v52 = vpop.eup %1075  ;;  %v297_v62 = vand.u32 2147483648, %v285_v53  ;;  %v295_v56 = vand.u32 2147483647, %v285_v53  ;;  %vm291_vm9 = vweird.f32 %v285_v53 }
 0x169   :  { %v307_v61 = vmul.f32 %v1076_v52, %v305_v59  ;;  %vm312_vm12 = vweird.f32 %v1076_v52 }
 0x16a   :  { %v298_v44 = vor.u32 1.1754944e-38, %v297_v62  ;;  %vm296_vm11 = vcmp.eq.f32.partialorder %v295_v56, 8.507059e+37  ;;  %vm313_vm14 = vmor %vm311_vm13, %vm312_vm12 }
 0x16b   :  { %v308_v47 = vsub.f32 1.0, %v307_v61  ;;  %v317_v61 = vand.u32 2147483648, %v305_v59 }
 0x16d   :  { %v309_v57 = vmul.f32 %v1076_v52, %v308_v47  ;;  %v318_v35 = vor.u32 1.1754944e-38, %v317_v61 }
 0x16e   :  { %v1078_v48 = vpop.eup %1077 }
 0x16f   :  { %v287_v60 = vmul.f32 %v1078_v48, %v285_v53  ;;  %vm292_vm8 = vweird.f32 %v1078_v48  ;;  %v310_v51 = vadd.f32 %v1076_v52, %v309_v57  ;;  %v1880_v57 = vld [vmem:[#allocation17_spill] sm:$0xff] }
 0x170   :  { %vm293_vm10 = vmor %vm291_vm9, %vm292_vm8 }
 0x171   :  { %v288_v41 = vsub.f32 1.0, %v287_v60  ;;  %v314_v47 = vsel %vm313_vm14, %v1076_v52, %v310_v51  ;;  %v1879_v52 = vld [vmem:[#allocation16_spill] sm:$0xff] }
 0x173   :  { %v289_v55 = vmul.f32 %v1078_v48, %v288_v41  ;;  %v315_v41 = vand.u32 2147483647, %v305_v59  ;;  %v1878_v59 = vld [vmem:[#allocation19_spill] sm:$0xff] }
 0x175   :  { %v290_v63 = vadd.f32 %v1078_v48, %v289_v55  ;;  %vm316_vm15 = vcmp.eq.f32.partialorder %v315_v41, 8.507059e+37 }
 0x176   :  { %v319_v53 = vsel %vm316_vm15, %v318_v35, %v314_v47  ;;  %v1873_v35 = vld [vmem:[#allocation12_spill] sm:$0xff] }
 0x177   :  { %v294_v50 = vsel %vm293_vm10, %v1078_v48, %v290_v63  ;;  %v325_v62 = vsub.f32 1.0, %v319_v53  ;;  %v327_v48 = vmul.f32 %v319_v53, %v1580_v54  ;;  %v1874_v54 = vld [vmem:[#allocation13_spill] sm:$0xff]  ;;  %v332_v63 = vld [vmem:[#allocation3 + $0x30] sm:$0xff] }
 0x178   :  { %v299_v39 = vsel %vm296_vm11, %v298_v44, %v294_v50  ;;  %v333_v44 = vld [vmem:[#allocation3 + $0x38] sm:$0xff] }
 0x179   :  { %v322_v60 = vmul.f32 %v321_v49, %v299_v39  ;;  %v1877_v39 = vld [vmem:[#allocation15_spill] sm:$0xff] }
 0x17b   :  { %v323_v36 = vadd.f32 %v322_v60, %v220_v38  ;;  %v1876_v38 = vld [vmem:[#allocation14_spill] sm:$0xff] }
 0x17d   :  { %1079 = vtanh.f32 %v323_v36  ;;  %v1875_v36 = vld [vmem:[#allocation18_spill] sm:$0xff] }
 0x183   :  { %v1080_v55 = vpop.eup %1079 }
 0x184   :  { %v326_v58 = vmul.f32 %v1080_v55, %v325_v62 }
 0x186   :  { %v1636_v56 = vadd.f32 %v327_v48, %v326_v58 }
 0x188   :  { %330 = vst [vmem:[#allocation8 + $0x8] sm:$0xff] %v1636_v56  ;;  %351 = vmatmul.f32.vlgmr.msrb.gmra.mxu2 %v1636_v56  ;;  %371 = vmatmul.f32.vlgmr.msrb.gmra.mxu3 %v1636_v56 }
 0x189   :  { %391 = vmatmul.f32.vlgmr.msra.gmra.mxu0 %v1636_v56  ;;  %603 = vmatpush.msrb.mxu2 %v1337_v12 }
 0x18a   :  { %677 = vmatpush.msrb.mxu3 %v1302_v0  ;;  %697 = vmatpush.msra.mxu0 %v1304_v1 }
 0x18b   :  { %604 = vmatpush.msrb.mxu2 %v1342_v13 }
 0x18c   :  { %678 = vmatpush.msrb.mxu3 %v1306_v2  ;;  %698 = vmatpush.msra.mxu0 %v1310_v3 }
 0x18d   :  { %605 = vmatpush.msrb.mxu2 %v1352_v16 }
 0x18e   :  { %679 = vmatpush.msrb.mxu3 %v1312_v4  ;;  %699 = vmatpush.msra.mxu0 %v1314_v5 }
 0x18f   :  { %606 = vmatpush.msrb.mxu2 %v1362_v19 }
 0x190   :  { %680 = vmatpush.msrb.mxu3 %v1319_v6  ;;  %700 = vmatpush.msra.mxu0 %v1321_v7 }
 0x191   :  { %607 = vmatpush.msrb.mxu2 %v1372_v22 }
 0x192   :  { %681 = vmatpush.msrb.mxu3 %v1326_v8  ;;  %701 = vmatpush.msra.mxu0 %v1328_v9 }
 0x193   :  { %608 = vmatpush.msrb.mxu2 %v1382_v25 }
 0x194   :  { %682 = vmatpush.msrb.mxu3 %v1333_v10  ;;  %702 = vmatpush.msra.mxu0 %v1335_v11 }
 0x195   :  { %609 = vmatpush.msrb.mxu2 %v1392_v28 }
 0x196   :  { %683 = vmatpush.msrb.mxu3 %v1344_v14  ;;  %703 = vmatpush.msra.mxu0 %v1346_v15 }
 0x197   :  { %610 = vmatpush.msrb.mxu2 %v1402_v31 }
 0x198   :  { %684 = vmatpush.msrb.mxu3 %v1354_v17  ;;  %704 = vmatpush.msra.mxu0 %v1356_v18 }
 0x199   :  { %611 = vmatpush.msrb.mxu2 %v1412_v34 }
 0x19a   :  { %685 = vmatpush.msrb.mxu3 %v1364_v20  ;;  %705 = vmatpush.msra.mxu0 %v1366_v21 }
 0x19b   :  { %612 = vmatpush.msrb.mxu2 %v1422_v37 }
 0x19c   :  { %686 = vmatpush.msrb.mxu3 %v1374_v23  ;;  %706 = vmatpush.msra.mxu0 %v1376_v24 }
 0x19d   :  { %613 = vmatpush.msrb.mxu2 %v1432_v40 }
 0x19e   :  { %687 = vmatpush.msrb.mxu3 %v1384_v26  ;;  %707 = vmatpush.msra.mxu0 %v1386_v27 }
 0x19f   :  { %614 = vmatpush.msrb.mxu2 %v1443_v43 }
 0x1a0   :  { %688 = vmatpush.msrb.mxu3 %v1394_v29  ;;  %708 = vmatpush.msra.mxu0 %v1396_v30 }
 0x1a1   :  { %615 = vmatpush.msrb.mxu2 %v1448_v45 }
 0x1a2   :  { %689 = vmatpush.msrb.mxu3 %v1404_v32  ;;  %709 = vmatpush.msra.mxu0 %v1406_v33 }
 0x1a3   :  { %616 = vmatpush.msrb.mxu2 %v1452_v46 }
 0x1a4   :  { %690 = vmatpush.msrb.mxu3 %v1873_v35  ;;  %710 = vmatpush.msra.mxu0 %v1874_v54 }
 0x1a5   :  { %617 = vmatpush.msrb.mxu2 %v1875_v36 }
 0x1a6   :  { %691 = vmatpush.msrb.mxu3 %v1876_v38  ;;  %711 = vmatpush.msra.mxu0 %v1877_v39 }
 0x1a7   :  { %618 = vmatpush.msrb.mxu2 %v1878_v59 }
 0x1a8   :  { %692 = vmatpush.msrb.mxu3 %v1879_v52  ;;  %712 = vmatpush.msra.mxu0 %v1880_v57 }
 0x20b   :  { %v352_v49 = vpop.f32.mrf.mxu2  ;;  %v372_v50 = vpop.f32.mrf.mxu3 }
 0x20c   :  { %v395_v51 = vadd.f32 %v352_v49, %v332_v63  ;;  %v415_v61 = vadd.f32 %v372_v50, %v333_v44  ;;  %v392_v44 = vpop.f32.mrf.mxu0 }
 0x20e   :  { %v1040_v60 = vmul.f32 -1.442695, %v395_v51  ;;  %v1041_v41 = vmul.f32 -1.442695, %v415_v61  ;;  %v435_v61 = vadd.f32 %v1577_v42, %v392_v44 }
 0x210   :  { %1081 = vpow2.f32 %v1040_v60 }
 0x211   :  { %1083 = vpow2.f32 %v1041_v41 }
 0x216   :  { %v1082_v47 = vpop.eup %1081 }
 0x217   :  { %v1084_v53 = vpop.eup %1083  ;;  %v399_v62 = vadd.f32 1.0, %v1082_v47 }
 0x218   :  { %v419_v55 = vadd.f32 1.0, %v1084_v53  ;;  %v334_v53 = vld [vmem:[#allocation3 + $0x40] sm:$0xff] }
 0x219   :  { %1085 = vrcp.f32 %v399_v62  ;;  %v411_v39 = vand.u32 2147483648, %v399_v62  ;;  %v409_v63 = vand.u32 2147483647, %v399_v62  ;;  %vm405_vm1 = vweird.f32 %v399_v62 }
 0x21a   :  { %1087 = vrcp.f32 %v419_v55  ;;  %v431_v54 = vand.u32 2147483648, %v419_v55  ;;  %vm425_vm5 = vweird.f32 %v419_v55 }
 0x21b   :  { %v412_v51 = vor.u32 1.1754944e-38, %v411_v39  ;;  %vm410_vm3 = vcmp.eq.f32.partialorder %v409_v63, 8.507059e+37 }
 0x21f   :  { %v1086_v58 = vpop.eup %1085 }
 0x220   :  { %v1088_v48 = vpop.eup %1087  ;;  %v401_v52 = vmul.f32 %v1086_v58, %v399_v62  ;;  %vm406_vm0 = vweird.f32 %v1086_v58 }
 0x221   :  { %v421_v57 = vmul.f32 %v1088_v48, %v419_v55  ;;  %vm407_vm2 = vmor %vm405_vm1, %vm406_vm0  ;;  %vm426_vm4 = vweird.f32 %v1088_v48 }
 0x222   :  { %v402_v59 = vsub.f32 1.0, %v401_v52  ;;  %vm427_vm6 = vmor %vm425_vm5, %vm426_vm4 }
 0x223   :  { %v422_v38 = vsub.f32 1.0, %v421_v57 }
 0x224   :  { %v403_v36 = vmul.f32 %v1086_v58, %v402_v59  ;;  %v429_v59 = vand.u32 2147483647, %v419_v55 }
 0x225   :  { %v423_v49 = vmul.f32 %v1088_v48, %v422_v38  ;;  %v432_v38 = vor.u32 1.1754944e-38, %v431_v54 }
 0x226   :  { %v404_v50 = vadd.f32 %v1086_v58, %v403_v36  ;;  %vm430_vm7 = vcmp.eq.f32.partialorder %v429_v59, 8.507059e+37  ;;  %v1145_v59 = vld [vmem:[#allocation6 + $0x150] sm:$0xff] }
 0x227   :  { %v424_v47 = vadd.f32 %v1088_v48, %v423_v49 }
 0x228   :  { %v408_v60 = vsel %vm407_vm2, %v1086_v58, %v404_v50 }
 0x229   :  { %v413_v41 = vsel %vm410_vm3, %v412_v51, %v408_v60  ;;  %v428_v35 = vsel %vm427_vm6, %v1088_v48, %v424_v47  ;;  %v1142_v47 = vld [vmem:[#allocation6 + $0x168] sm:$0xff] }
 0x22a   :  { %v436_v52 = vmul.f32 %v435_v61, %v413_v41  ;;  %v433_v36 = vsel %vm430_vm7, %v432_v38, %v428_v35  ;;  %v1754_v41 = vld [vmem:[#allocation6 + $0x178] sm:$0xff]  ;;  %v1760_v38 = vld [vmem:[#allocation6 + $0x148] sm:$0xff] }
 0x22b   :  { %v439_v39 = vsub.f32 1.0, %v433_v36  ;;  %v441_v58 = vmul.f32 %v433_v36, %v1636_v56  ;;  %v1148_v36 = vld [vmem:[#allocation6 + $0x138] sm:$0xff] }
 0x22c   :  { %v437_v57 = vadd.f32 %v436_v52, %v334_v53  ;;  %v1143_v53 = vld [vmem:[#allocation6 + $0x170] sm:$0xff]  ;;  %v1757_v52 = vld [vmem:[#allocation6 + $0x160] sm:$0xff] }
 0x22e   :  { %1089 = vtanh.f32 %v437_v57  ;;  %v1146_v57 = vld [vmem:[#allocation6 + $0x158] sm:$0xff] }
 0x234   :  { %v1090_v62 = vpop.eup %1089 }
 0x235   :  { %v440_v44 = vmul.f32 %v1090_v62, %v439_v39  ;;  %v1149_v39 = vld [vmem:[#allocation6 + $0x140] sm:$0xff]  ;;  %v1763_v62 = vld [vmem:[#allocation6 + $0x130] sm:$0xff] }
 0x237   :  { %v1692_v63 = vadd.f32 %v441_v58, %v440_v44  ;;  %v1151_v44 = vld [vmem:[#allocation6 + $0x120] sm:$0xff]  ;;  %v1152_v58 = vld [vmem:[#allocation6 + $0x128] sm:$0xff] }
 0x239   :  { %444 = vst [vmem:[#allocation8 + $0x10] sm:$0xff] %v1692_v63  ;;  %465 = vmatmul.f32.vlgmr.msra.gmra.mxu1 %v1692_v63  ;;  %485 = vmatmul.f32.vlgmr.msra.gmra.mxu2 %v1692_v63 }
 0x23a   :  { %505 = vmatmul.f32.vlgmr.msra.gmra.mxu3 %v1692_v63  ;;  %717 = vmatpush.msra.mxu1 %v1337_v12  ;;  %v447_v12 = vld [vmem:[#allocation3 + $0x50] sm:$0xff] }
 0x23b   :  { %791 = vmatpush.msra.mxu2 %v1302_v0  ;;  %811 = vmatpush.msra.mxu3 %v1304_v1  ;;  %v1881_v0 = vld [vmem:[#allocation12_spill] sm:$0xff]  ;;  %v1882_v1 = vld [vmem:[#allocation13_spill] sm:$0xff] }
 0x23c   :  { %718 = vmatpush.msra.mxu1 %v1342_v13 }
 0x23d   :  { %792 = vmatpush.msra.mxu2 %v1306_v2  ;;  %812 = vmatpush.msra.mxu3 %v1310_v3  ;;  %v1883_v2 = vld [vmem:[#allocation18_spill] sm:$0xff] }
 0x23e   :  { %719 = vmatpush.msra.mxu1 %v1352_v16  ;;  %v1884_v3 = vld [vmem:[#allocation14_spill] sm:$0xff] }
 0x23f   :  { %793 = vmatpush.msra.mxu2 %v1312_v4  ;;  %813 = vmatpush.msra.mxu3 %v1314_v5  ;;  %v1885_v4 = vld [vmem:[#allocation15_spill] sm:$0xff] }
 0x240   :  { %720 = vmatpush.msra.mxu1 %v1362_v19  ;;  %v1886_v5 = vld [vmem:[#allocation19_spill] sm:$0xff] }
 0x241   :  { %794 = vmatpush.msra.mxu2 %v1319_v6  ;;  %814 = vmatpush.msra.mxu3 %v1321_v7  ;;  %v1887_v6 = vld [vmem:[#allocation16_spill] sm:$0xff]  ;;  %v1888_v7 = vld [vmem:[#allocation17_spill] sm:$0xff] }
 0x242   :  { %721 = vmatpush.msra.mxu1 %v1372_v22 }
 0x243   :  { %795 = vmatpush.msra.mxu2 %v1326_v8  ;;  %815 = vmatpush.msra.mxu3 %v1328_v9  ;;  %v446_v8 = vld [vmem:[#allocation3 + $0x48] sm:$0xff] }
 0x244   :  { %722 = vmatpush.msra.mxu1 %v1382_v25 }
 0x245   :  { %796 = vmatpush.msra.mxu2 %v1333_v10  ;;  %816 = vmatpush.msra.mxu3 %v1335_v11 }
 0x246   :  { %723 = vmatpush.msra.mxu1 %v1392_v28 }
 0x247   :  { %797 = vmatpush.msra.mxu2 %v1344_v14  ;;  %817 = vmatpush.msra.mxu3 %v1346_v15 }
 0x248   :  { %724 = vmatpush.msra.mxu1 %v1402_v31 }
 0x249   :  { %798 = vmatpush.msra.mxu2 %v1354_v17  ;;  %818 = vmatpush.msra.mxu3 %v1356_v18 }
 0x24a   :  { %725 = vmatpush.msra.mxu1 %v1412_v34  ;;  %v448_v34 = vld [vmem:[#allocation3 + $0x58] sm:$0xff] }
 0x24b   :  { %799 = vmatpush.msra.mxu2 %v1364_v20  ;;  %819 = vmatpush.msra.mxu3 %v1366_v21 }
 0x24c   :  { %726 = vmatpush.msra.mxu1 %v1422_v37 }
 0x24d   :  { %800 = vmatpush.msra.mxu2 %v1374_v23  ;;  %820 = vmatpush.msra.mxu3 %v1376_v24 }
 0x24e   :  { %727 = vmatpush.msra.mxu1 %v1432_v40 }
 0x24f   :  { %801 = vmatpush.msra.mxu2 %v1384_v26  ;;  %821 = vmatpush.msra.mxu3 %v1386_v27 }
 0x250   :  { %728 = vmatpush.msra.mxu1 %v1443_v43 }
 0x251   :  { %802 = vmatpush.msra.mxu2 %v1394_v29  ;;  %822 = vmatpush.msra.mxu3 %v1396_v30 }
 0x252   :  { %729 = vmatpush.msra.mxu1 %v1448_v45 }
 0x253   :  { %803 = vmatpush.msra.mxu2 %v1404_v32  ;;  %823 = vmatpush.msra.mxu3 %v1406_v33 }
 0x254   :  { %730 = vmatpush.msra.mxu1 %v1452_v46 }
 0x255   :  { %804 = vmatpush.msra.mxu2 %v1881_v0  ;;  %824 = vmatpush.msra.mxu3 %v1882_v1  ;;  %v1154_v0 = vld [vmem:[#allocation6 + $0x108] sm:$0xff]  ;;  %v1155_v1 = vld [vmem:[#allocation6 + $0x110] sm:$0xff] }
 0x256   :  { %731 = vmatpush.msra.mxu1 %v1883_v2  ;;  %v1769_v2 = vld [vmem:[#allocation6 + $0x100] sm:$0xff] }
 0x257   :  { %805 = vmatpush.msra.mxu2 %v1884_v3  ;;  %825 = vmatpush.msra.mxu3 %v1885_v4  ;;  %v1157_v3 = vld [vmem:[#allocation6 + $0xf0] sm:$0xff]  ;;  %v1158_v4 = vld [vmem:[#allocation6 + $0xf8] sm:$0xff] }
 0x258   :  { %732 = vmatpush.msra.mxu1 %v1886_v5  ;;  %v1772_v5 = vld [vmem:[#allocation6 + $0xe8] sm:$0xff] }
 0x259   :  { %806 = vmatpush.msra.mxu2 %v1887_v6  ;;  %826 = vmatpush.msra.mxu3 %v1888_v7  ;;  %v1160_v6 = vld [vmem:[#allocation6 + $0xd8] sm:$0xff]  ;;  %v1161_v7 = vld [vmem:[#allocation6 + $0xe0] sm:$0xff] }
 0x2b6   :  { %v466_v9 = vpop.f32.mrf.mxu1 }
 0x2b7   :  { %v509_v10 = vadd.f32 %v466_v9, %v446_v8  ;;  %v1775_v8 = vld [vmem:[#allocation6 + $0xd0] sm:$0xff]  ;;  %v1163_v9 = vld [vmem:[#allocation6 + $0xc0] sm:$0xff] }
 0x2b9   :  { %v1042_v11 = vmul.f32 -1.442695, %v509_v10  ;;  %v1164_v10 = vld [vmem:[#allocation6 + $0xc8] sm:$0xff] }
 0x2bb   :  { %1091 = vpow2.f32 %v1042_v11  ;;  %v1778_v11 = vld [vmem:[#allocation6 + $0xb8] sm:$0xff] }
 0x2bc   :  { %v486_v13 = vpop.f32.mrf.mxu2 }
 0x2bd   :  { %v529_v14 = vadd.f32 %v486_v13, %v447_v12  ;;  %v506_v27 = vpop.f32.mrf.mxu3  ;;  %v1166_v12 = vld [vmem:[#allocation6 + $0xa8] sm:$0xff]  ;;  %v1167_v13 = vld [vmem:[#allocation6 + $0xb0] sm:$0xff] }
 0x2be   :  { %v549_v33 = vadd.f32 %v1577_v42, %v506_v27  ;;  %v1181_v27 = vld [vmem:[#allocation6 + $0x30] sm:$0xff] }
 0x2bf   :  { %v1043_v15 = vmul.f32 -1.442695, %v529_v14  ;;  %v1781_v14 = vld [vmem:[#allocation6 + $0xa0] sm:$0xff] }
 0x2c1   :  { %v1092_v16 = vpop.eup %1091  ;;  %1093 = vpow2.f32 %v1043_v15  ;;  %v1169_v15 = vld [vmem:[#allocation6 + $0x90] sm:$0xff] }
 0x2c2   :  { %v513_v17 = vadd.f32 1.0, %v1092_v16  ;;  %v1170_v16 = vld [vmem:[#allocation6 + $0x98] sm:$0xff] }
 0x2c4   :  { %1095 = vrcp.f32 %v513_v17  ;;  %v525_v23 = vand.u32 2147483648, %v513_v17  ;;  %v523_v25 = vand.u32 2147483647, %v513_v17  ;;  %vm519_vm9 = vweird.f32 %v513_v17 }
 0x2c6   :  { %v526_v30 = vor.u32 1.1754944e-38, %v525_v23  ;;  %vm524_vm11 = vcmp.eq.f32.partialorder %v523_v25, 8.507059e+37  ;;  %v1790_v23 = vld [vmem:[#allocation6 + $0x58] sm:$0xff]  ;;  %v1179_v25 = vld [vmem:[#allocation6 + $0x50] sm:$0xff] }
 0x2c7   :  { %v1094_v18 = vpop.eup %1093 }
 0x2c8   :  { %v533_v19 = vadd.f32 1.0, %v1094_v18  ;;  %v1172_v18 = vld [vmem:[#allocation6 + $0x78] sm:$0xff] }
 0x2ca   :  { %v1096_v20 = vpop.eup %1095  ;;  %1097 = vrcp.f32 %v533_v19  ;;  %v545_v43 = vand.u32 2147483648, %v533_v19  ;;  %v543_v46 = vand.u32 2147483647, %v533_v19  ;;  %vm539_vm13 = vweird.f32 %v533_v19 }
 0x2cb   :  { %v515_v21 = vmul.f32 %v1096_v20, %v513_v17  ;;  %vm520_vm8 = vweird.f32 %v1096_v20  ;;  %v1784_v17 = vld [vmem:[#allocation6 + $0x88] sm:$0xff] }
 0x2cc   :  { %vm521_vm10 = vmor %vm519_vm9, %vm520_vm8  ;;  %v546_v54 = vor.u32 1.1754944e-38, %v545_v43  ;;  %vm544_vm15 = vcmp.eq.f32.partialorder %v543_v46, 8.507059e+37 }
 0x2cd   :  { %v516_v22 = vsub.f32 1.0, %v515_v21  ;;  %v1175_v21 = vld [vmem:[#allocation6 + $0x60] sm:$0xff] }
 0x2cf   :  { %v517_v24 = vmul.f32 %v1096_v20, %v516_v22  ;;  %v1176_v22 = vld [vmem:[#allocation6 + $0x68] sm:$0xff] }
 0x2d0   :  { %v1098_v26 = vpop.eup %1097 }
 0x2d1   :  { %v535_v28 = vmul.f32 %v1098_v26, %v533_v19  ;;  %v518_v29 = vadd.f32 %v1096_v20, %v517_v24  ;;  %vm540_vm12 = vweird.f32 %v1098_v26  ;;  %v1173_v19 = vld [vmem:[#allocation6 + $0x80] sm:$0xff]  ;;  %v1178_v24 = vld [vmem:[#allocation6 + $0x48] sm:$0xff] }
 0x2d2   :  { %vm541_vm14 = vmor %vm539_vm13, %vm540_vm12 }
 0x2d3   :  { %v536_v31 = vsub.f32 1.0, %v535_v28  ;;  %v522_v32 = vsel %vm521_vm10, %v1096_v20, %v518_v29  ;;  %v1787_v20 = vld [vmem:[#allocation6 + $0x70] sm:$0xff]  ;;  %v1182_v28 = vld [vmem:[#allocation6 + $0x38] sm:$0xff]  ;;  %v1796_v29 = vld [vmem:[#allocation6 + $0x28] sm:$0xff] }
 0x2d4   :  { %v527_v37 = vsel %vm524_vm11, %v526_v30, %v522_v32  ;;  %v1184_v30 = vld [vmem:[#allocation6 + $0x18] sm:$0xff]  ;;  %v1799_v32 = vld [vmem:[#allocation6 + $0x10] sm:$0xff] }
 0x2d5   :  { %v537_v40 = vmul.f32 %v1098_v26, %v536_v31  ;;  %v550_v45 = vmul.f32 %v549_v33, %v527_v37  ;;  %v1185_v31 = vld [vmem:[#allocation6 + $0x20] sm:$0xff] }
 0x2d6   :  { %v1187_v33 = vld [vmem:[#allocation6] sm:$0xff] }
 0x2d7   :  { %v538_v56 = vadd.f32 %v1098_v26, %v537_v40  ;;  %v551_v35 = vadd.f32 %v550_v45, %v448_v34  ;;  %v1188_v34 = vld [vmem:[#allocation6 + $0x8] sm:$0xff]  ;;  %v560_v37 = vld [vmem:[#allocation3 + $0x60] sm:$0xff] }
 0x2d8   :  { %v561_v40 = vld [vmem:[#allocation3 + $0x68] sm:$0xff] }
 0x2d9   :  { %v542_v55 = vsel %vm541_vm14, %v1098_v26, %v538_v56  ;;  %1099 = vtanh.f32 %v551_v35  ;;  %v1793_v26 = vld [vmem:[#allocation6 + $0x40] sm:$0xff] }
 0x2da   :  { %v547_v48 = vsel %vm544_vm15, %v546_v54, %v542_v55 }
 0x2db   :  { %v553_v49 = vsub.f32 1.0, %v547_v48  ;;  %v555_v61 = vmul.f32 %v547_v48, %v1692_v63  ;;  %v1766_v63 = vld [vmem:[#allocation6 + $0x118] sm:$0xff] }
 0x2df   :  { %v1100_v50 = vpop.eup %1099 }
 0x2e0   :  { %v554_v51 = vmul.f32 %v1100_v50, %v553_v49 }
 0x2e2   :  { %v1748_v60 = vadd.f32 %v555_v61, %v554_v51 }
 0x2e4   :  { %558 = vst [vmem:[#allocation8 + $0x18] sm:$0xff] %v1748_v60  ;;  %579 = vmatmul.f32.vlgmr.msrb.gmra.mxu0 %v1748_v60  ;;  %599 = vmatmul.f32.vlgmr.msrb.gmra.mxu1 %v1748_v60 }
 0x2e5   :  { %619 = vmatmul.f32.vlgmr.msrb.gmra.mxu2 %v1748_v60  ;;  %831 = vmatpush.msrb.mxu0 %v1754_v41 }
 0x2e6   :  { %905 = vmatpush.msrb.mxu1 %v1142_v47  ;;  %925 = vmatpush.msrb.mxu2 %v1143_v53 }
 0x2e7   :  { %832 = vmatpush.msrb.mxu0 %v1757_v52 }
 0x2e8   :  { %906 = vmatpush.msrb.mxu1 %v1145_v59  ;;  %926 = vmatpush.msrb.mxu2 %v1146_v57 }
 0x2e9   :  { %833 = vmatpush.msrb.mxu0 %v1760_v38 }
 0x2ea   :  { %907 = vmatpush.msrb.mxu1 %v1148_v36  ;;  %927 = vmatpush.msrb.mxu2 %v1149_v39 }
 0x2eb   :  { %834 = vmatpush.msrb.mxu0 %v1763_v62 }
 0x2ec   :  { %908 = vmatpush.msrb.mxu1 %v1151_v44  ;;  %928 = vmatpush.msrb.mxu2 %v1152_v58 }
 0x2ed   :  { %835 = vmatpush.msrb.mxu0 %v1766_v63 }
 0x2ee   :  { %909 = vmatpush.msrb.mxu1 %v1154_v0  ;;  %929 = vmatpush.msrb.mxu2 %v1155_v1 }
 0x2ef   :  { %836 = vmatpush.msrb.mxu0 %v1769_v2 }
 0x2f0   :  { %910 = vmatpush.msrb.mxu1 %v1157_v3  ;;  %930 = vmatpush.msrb.mxu2 %v1158_v4 }
 0x2f1   :  { %837 = vmatpush.msrb.mxu0 %v1772_v5 }
 0x2f2   :  { %911 = vmatpush.msrb.mxu1 %v1160_v6  ;;  %931 = vmatpush.msrb.mxu2 %v1161_v7 }
 0x2f3   :  { %838 = vmatpush.msrb.mxu0 %v1775_v8 }
 0x2f4   :  { %912 = vmatpush.msrb.mxu1 %v1163_v9  ;;  %932 = vmatpush.msrb.mxu2 %v1164_v10  ;;  %v562_v9 = vld [vmem:[#allocation3 + $0x70] sm:$0xff] }
 0x2f5   :  { %839 = vmatpush.msrb.mxu0 %v1778_v11 }
 0x2f6   :  { %913 = vmatpush.msrb.mxu1 %v1166_v12  ;;  %933 = vmatpush.msrb.mxu2 %v1167_v13 }
 0x2f7   :  { %840 = vmatpush.msrb.mxu0 %v1781_v14 }
 0x2f8   :  { %914 = vmatpush.msrb.mxu1 %v1169_v15  ;;  %934 = vmatpush.msrb.mxu2 %v1170_v16 }
 0x2f9   :  { %841 = vmatpush.msrb.mxu0 %v1784_v17 }
 0x2fa   :  { %915 = vmatpush.msrb.mxu1 %v1172_v18  ;;  %935 = vmatpush.msrb.mxu2 %v1173_v19 }
 0x2fb   :  { %842 = vmatpush.msrb.mxu0 %v1787_v20 }
 0x2fc   :  { %916 = vmatpush.msrb.mxu1 %v1175_v21  ;;  %936 = vmatpush.msrb.mxu2 %v1176_v22 }
 0x2fd   :  { %843 = vmatpush.msrb.mxu0 %v1790_v23 }
 0x2fe   :  { %917 = vmatpush.msrb.mxu1 %v1178_v24  ;;  %937 = vmatpush.msrb.mxu2 %v1179_v25 }
 0x2ff   :  { %844 = vmatpush.msrb.mxu0 %v1793_v26 }
 0x300   :  { %918 = vmatpush.msrb.mxu1 %v1181_v27  ;;  %938 = vmatpush.msrb.mxu2 %v1182_v28 }
 0x301   :  { %845 = vmatpush.msrb.mxu0 %v1796_v29 }
 0x302   :  { %919 = vmatpush.msrb.mxu1 %v1184_v30  ;;  %939 = vmatpush.msrb.mxu2 %v1185_v31 }
 0x303   :  { %846 = vmatpush.msrb.mxu0 %v1799_v32 }
 0x304   :  { %920 = vmatpush.msrb.mxu1 %v1187_v33  ;;  %940 = vmatpush.msrb.mxu2 %v1188_v34 }
 0x361   :  { %v580_v43 = vpop.f32.mrf.mxu0  ;;  %v600_v45 = vpop.f32.mrf.mxu1 }
 0x362   :  { %v623_v46 = vadd.f32 %v580_v43, %v560_v37  ;;  %v643_v56 = vadd.f32 %v600_v45, %v561_v40  ;;  %v1829_v45 = vld [vmem:[%s1840_s2] ss:$0 sm:$0xff]  ;;  %s1273_s2 = smov [#allocation8]  }
 0x363   :  { %s1020_s26 = sshll.u32 %s1273_s2, 4  ;;  %s1021_s26 = int_to_ptr.vmem [resolvable:$true] %s1020_s26 }
 0x364   :  { %v1044_v35 = vmul.f32 -1.442695, %v623_v46  ;;  %v1045_v54 = vmul.f32 -1.442695, %v643_v56 }
 0x366   :  { %1101 = vpow2.f32 %v1044_v35 }
 0x367   :  { %1103 = vpow2.f32 %v1045_v54 }
 0x368   :  { %v620_v0 = vpop.f32.mrf.mxu2 }
 0x369   :  { %v663_v6 = vadd.f32 %v1577_v42, %v620_v0  ;;  %v789_v0 = vld [vmem:[#allocation3 + $0x98] sm:$0xff] }
 0x36c   :  { %v1102_v55 = vpop.eup %1101 }
 0x36d   :  { %v1104_v48 = vpop.eup %1103  ;;  %v627_v49 = vadd.f32 1.0, %v1102_v55  ;;  %v676_v55 = vld [vmem:[#allocation3 + $0x88] sm:$0xff] }
 0x36e   :  { %v647_v50 = vadd.f32 1.0, %v1104_v48 }
 0x36f   :  { %1105 = vrcp.f32 %v627_v49  ;;  %v639_v36 = vand.u32 2147483648, %v627_v49  ;;  %v637_v44 = vand.u32 2147483647, %v627_v49  ;;  %vm633_vm1 = vweird.f32 %v627_v49 }
 0x370   :  { %1107 = vrcp.f32 %v647_v50  ;;  %v659_v12 = vand.u32 2147483648, %v647_v50  ;;  %vm653_vm5 = vweird.f32 %v647_v50  ;;  %v657_v15 = vand.u32 2147483647, %v647_v50 }
 0x371   :  { %v640_v3 = vor.u32 1.1754944e-38, %v639_v36  ;;  %vm638_vm3 = vcmp.eq.f32.partialorder %v637_v44, 8.507059e+37 }
 0x372   :  { %v660_v19 = vor.u32 1.1754944e-38, %v659_v12  ;;  %vm658_vm7 = vcmp.eq.f32.partialorder %v657_v15, 8.507059e+37 }
 0x375   :  { %v1106_v51 = vpop.eup %1105 }
 0x376   :  { %v1108_v61 = vpop.eup %1107  ;;  %v629_v47 = vmul.f32 %v1106_v51, %v627_v49  ;;  %vm634_vm0 = vweird.f32 %v1106_v51 }
 0x377   :  { %v649_v53 = vmul.f32 %v1108_v61, %v647_v50  ;;  %vm635_vm2 = vmor %vm633_vm1, %vm634_vm0  ;;  %vm654_vm4 = vweird.f32 %v1108_v61 }
 0x378   :  { %v630_v59 = vsub.f32 1.0, %v629_v47  ;;  %vm655_vm6 = vmor %vm653_vm5, %vm654_vm4 }
 0x379   :  { %v650_v57 = vsub.f32 1.0, %v649_v53 }
 0x37a   :  { %v631_v39 = vmul.f32 %v1106_v51, %v630_v59 }
 0x37b   :  { %v651_v58 = vmul.f32 %v1108_v61, %v650_v57 }
 0x37c   :  { %v632_v1 = vadd.f32 %v1106_v51, %v631_v39 }
 0x37d   :  { %v652_v7 = vadd.f32 %v1108_v61, %v651_v58  ;;  %v788_v58 = vld [vmem:[#allocation3 + $0x90] sm:$0xff] }
 0x37e   :  { %v636_v4 = vsel %vm635_vm2, %v1106_v51, %v632_v1 }
 0x37f   :  { %v641_v10 = vsel %vm638_vm3, %v640_v3, %v636_v4  ;;  %v656_v18 = vsel %vm655_vm6, %v1108_v61, %v652_v7 }
 0x380   :  { %v664_v13 = vmul.f32 %v663_v6, %v641_v10  ;;  %v661_v21 = vsel %vm658_vm7, %v660_v19, %v656_v18 }
 0x381   :  { %v667_v22 = vsub.f32 1.0, %v661_v21  ;;  %v669_v42 = vmul.f32 %v661_v21, %v1748_v60  ;;  %v675_v60 = vld [vmem:[#allocation3 + $0x80] sm:$0xff] }
 0x382   :  { %v665_v16 = vadd.f32 %v664_v13, %v562_v9 }
 0x384   :  { %1109 = vtanh.f32 %v665_v16 }
 0x38a   :  { %v1110_v24 = vpop.eup %1109 }
 0x38b   :  { %v668_v25 = vmul.f32 %v1110_v24, %v667_v22 }
 0x38d   :  { %v1804_v27 = vadd.f32 %v669_v42, %v668_v25 }
 0x38f   :  { %672 = vst [vmem:[#allocation8 + $0x20] sm:$0xff] %v1804_v27  ;;  %693 = vmatmul.f32.vlgmr.msrb.gmra.mxu3 %v1804_v27  ;;  %713 = vmatmul.f32.vlgmr.msra.gmra.mxu0 %v1804_v27 }
 0x390   :  { %733 = vmatmul.f32.vlgmr.msra.gmra.mxu1 %v1804_v27  ;;  %945 = vmatpush.msrb.mxu3 %v1754_v41 }
 0x392   :  { %946 = vmatpush.msrb.mxu3 %v1757_v52 }
 0x394   :  { %947 = vmatpush.msrb.mxu3 %v1760_v38 }
 0x396   :  { %948 = vmatpush.msrb.mxu3 %v1763_v62  ;;  %v674_v62 = vld [vmem:[#allocation3 + $0x78] sm:$0xff] }
 0x398   :  { %949 = vmatpush.msrb.mxu3 %v1766_v63 }
 0x39a   :  { %950 = vmatpush.msrb.mxu3 %v1769_v2 }
 0x39c   :  { %951 = vmatpush.msrb.mxu3 %v1772_v5 }
 0x39e   :  { %952 = vmatpush.msrb.mxu3 %v1775_v8 }
 0x3a0   :  { %953 = vmatpush.msrb.mxu3 %v1778_v11 }
 0x3a2   :  { %954 = vmatpush.msrb.mxu3 %v1781_v14 }
 0x3a4   :  { %955 = vmatpush.msrb.mxu3 %v1784_v17 }
 0x3a6   :  { %956 = vmatpush.msrb.mxu3 %v1787_v20 }
 0x3a8   :  { %957 = vmatpush.msrb.mxu3 %v1790_v23 }
 0x3aa   :  { %958 = vmatpush.msrb.mxu3 %v1793_v26 }
 0x3ac   :  { %959 = vmatpush.msrb.mxu3 %v1796_v29 }
 0x3ae   :  { %960 = vmatpush.msrb.mxu3 %v1799_v32 }
 0x40c   :  { %v714_v41 = vpop.f32.mrf.mxu0 }
 0x40d   :  { %v757_v52 = vadd.f32 %v714_v41, %v675_v60  ;;  %v734_v37 = vpop.f32.mrf.mxu1 }
 0x40e   :  { %v777_v46 = vadd.f32 %v1829_v45, %v734_v37 }
 0x40f   :  { %v1047_v38 = vmul.f32 -1.442695, %v757_v52 }
 0x411   :  { %1111 = vpow2.f32 %v1047_v38 }
 0x412   :  { %v694_v63 = vpop.f32.mrf.mxu3 }
 0x413   :  { %v737_v2 = vadd.f32 %v694_v63, %v674_v62 }
 0x415   :  { %v1046_v5 = vmul.f32 -1.442695, %v737_v2 }
 0x417   :  { %v1112_v8 = vpop.eup %1111  ;;  %1113 = vpow2.f32 %v1046_v5 }
 0x418   :  { %v761_v11 = vadd.f32 1.0, %v1112_v8  ;;  %v790_v8 = vld [vmem:[#allocation3 + $0xa0] sm:$0xff] }
 0x41a   :  { %1115 = vrcp.f32 %v761_v11  ;;  %v773_v48 = vand.u32 2147483648, %v761_v11  ;;  %vm767_vm13 = vweird.f32 %v761_v11  ;;  %v771_v50 = vand.u32 2147483647, %v761_v11 }
 0x41c   :  { %v774_v47 = vor.u32 1.1754944e-38, %v773_v48  ;;  %vm772_vm15 = vcmp.eq.f32.partialorder %v771_v50, 8.507059e+37 }
 0x41d   :  { %v1114_v14 = vpop.eup %1113 }
 0x41e   :  { %v741_v17 = vadd.f32 1.0, %v1114_v14 }
 0x420   :  { %1117 = vrcp.f32 %v741_v17  ;;  %v1116_v20 = vpop.eup %1115  ;;  %v753_v31 = vand.u32 2147483648, %v741_v17  ;;  %v751_v33 = vand.u32 2147483647, %v741_v17  ;;  %vm747_vm9 = vweird.f32 %v741_v17 }
 0x421   :  { %v763_v23 = vmul.f32 %v1116_v20, %v761_v11  ;;  %vm768_vm12 = vweird.f32 %v1116_v20 }
 0x422   :  { %v754_v43 = vor.u32 1.1754944e-38, %v753_v31  ;;  %vm752_vm11 = vcmp.eq.f32.partialorder %v751_v33, 8.507059e+37  ;;  %vm769_vm14 = vmor %vm767_vm13, %vm768_vm12 }
 0x423   :  { %v764_v29 = vsub.f32 1.0, %v763_v23 }
 0x425   :  { %v765_v34 = vmul.f32 %v1116_v20, %v764_v29 }
 0x426   :  { %v1118_v26 = vpop.eup %1117 }
 0x427   :  { %v743_v28 = vmul.f32 %v1118_v26, %v741_v17  ;;  %vm748_vm8 = vweird.f32 %v1118_v26  ;;  %v766_v35 = vadd.f32 %v1116_v20, %v765_v34  ;;  %v902_v34 = vld [vmem:[#allocation3 + $0xa8] sm:$0xff] }
 0x428   :  { %vm749_vm10 = vmor %vm747_vm9, %vm748_vm8 }
 0x429   :  { %v744_v30 = vsub.f32 1.0, %v743_v28  ;;  %v770_v61 = vsel %vm769_vm14, %v1116_v20, %v766_v35 }
 0x42a   :  { %v775_v53 = vsel %vm772_vm15, %v774_v47, %v770_v61 }
 0x42b   :  { %v745_v32 = vmul.f32 %v1118_v26, %v744_v30  ;;  %v781_v59 = vsub.f32 1.0, %v775_v53  ;;  %v783_v39 = vmul.f32 %v775_v53, %v1804_v27 }
 0x42d   :  { %v746_v40 = vadd.f32 %v1118_v26, %v745_v32 }
 0x42f   :  { %v750_v56 = vsel %vm749_vm10, %v1118_v26, %v746_v40 }
 0x430   :  { %v755_v54 = vsel %vm752_vm11, %v754_v43, %v750_v56 }
 0x431   :  { %v778_v49 = vmul.f32 %v777_v46, %v755_v54  ;;  %v903_v46 = vld [vmem:[#allocation3 + $0xb0] sm:$0xff] }
 0x433   :  { %v779_v51 = vadd.f32 %v778_v49, %v676_v55 }
 0x435   :  { %1119 = vtanh.f32 %v779_v51 }
 0x43b   :  { %v1120_v57 = vpop.eup %1119 }
 0x43c   :  { %v782_v36 = vmul.f32 %v1120_v57, %v781_v59 }
 0x43e   :  { %v784_v44 = vadd.f32 %v783_v39, %v782_v36 }
 0x440   :  { %786 = vst [vmem:[#allocation8 + $0x28] sm:$0xff] %v784_v44  ;;  %807 = vmatmul.f32.vlgmr.msra.gmra.mxu2 %v784_v44  ;;  %827 = vmatmul.f32.vlgmr.msra.gmra.mxu3 %v784_v44 }
 0x441   :  { %847 = vmatmul.f32.vlgmr.msrb.gmra.mxu0 %v784_v44 }
 0x4be   :  { %v848_v60 = vpop.f32.mrf.mxu0 }
 0x4bf   :  { %v891_v62 = vadd.f32 %v1829_v45, %v848_v60 }
 0x4c3   :  { %v808_v1 = vpop.f32.mrf.mxu2  ;;  %v828_v3 = vpop.f32.mrf.mxu3 }
 0x4c4   :  { %v851_v4 = vadd.f32 %v808_v1, %v788_v58  ;;  %v871_v6 = vadd.f32 %v828_v3, %v789_v0 }
 0x4c6   :  { %v1048_v7 = vmul.f32 -1.442695, %v851_v4  ;;  %v1049_v9 = vmul.f32 -1.442695, %v871_v6  ;;  %v904_v6 = vld [vmem:[#allocation3 + $0xb8] sm:$0xff] }
 0x4c8   :  { %1121 = vpow2.f32 %v1048_v7 }
 0x4c9   :  { %1123 = vpow2.f32 %v1049_v9 }
 0x4ce   :  { %v1122_v10 = vpop.eup %1121 }
 0x4cf   :  { %v1124_v12 = vpop.eup %1123  ;;  %v855_v13 = vadd.f32 1.0, %v1122_v10 }
 0x4d0   :  { %v875_v15 = vadd.f32 1.0, %v1124_v12 }
 0x4d1   :  { %1125 = vrcp.f32 %v855_v13  ;;  %v867_v24 = vand.u32 2147483648, %v855_v13  ;;  %v865_v27 = vand.u32 2147483647, %v855_v13  ;;  %vm861_vm1 = vweird.f32 %v855_v13 }
 0x4d2   :  { %1127 = vrcp.f32 %v875_v15  ;;  %v887_v14 = vand.u32 2147483648, %v875_v15  ;;  %vm881_vm5 = vweird.f32 %v875_v15  ;;  %v885_v17 = vand.u32 2147483647, %v875_v15 }
 0x4d3   :  { %v868_v38 = vor.u32 1.1754944e-38, %v867_v24  ;;  %vm866_vm3 = vcmp.eq.f32.partialorder %v865_v27, 8.507059e+37 }
 0x4d4   :  { %v888_v26 = vor.u32 1.1754944e-38, %v887_v14  ;;  %vm886_vm7 = vcmp.eq.f32.partialorder %v885_v17, 8.507059e+37 }
 0x4d7   :  { %v1126_v16 = vpop.eup %1125 }
 0x4d8   :  { %v1128_v18 = vpop.eup %1127  ;;  %v857_v19 = vmul.f32 %v1126_v16, %v855_v13  ;;  %vm862_vm0 = vweird.f32 %v1126_v16 }
 0x4d9   :  { %v877_v21 = vmul.f32 %v1128_v18, %v875_v15  ;;  %vm863_vm2 = vmor %vm861_vm1, %vm862_vm0  ;;  %vm882_vm4 = vweird.f32 %v1128_v18 }
 0x4da   :  { %v858_v22 = vsub.f32 1.0, %v857_v19  ;;  %vm883_vm6 = vmor %vm881_vm5, %vm882_vm4 }
 0x4db   :  { %v878_v25 = vsub.f32 1.0, %v877_v21 }
 0x4dc   :  { %v859_v42 = vmul.f32 %v1126_v16, %v858_v22 }
 0x4dd   :  { %v879_v41 = vmul.f32 %v1128_v18, %v878_v25 }
 0x4de   :  { %v860_v52 = vadd.f32 %v1126_v16, %v859_v42 }
 0x4df   :  { %v880_v5 = vadd.f32 %v1128_v18, %v879_v41 }
 0x4e0   :  { %v864_v63 = vsel %vm863_vm2, %v1126_v16, %v860_v52 }
 0x4e1   :  { %v869_v2 = vsel %vm866_vm3, %v868_v38, %v864_v63  ;;  %v884_v23 = vsel %vm883_vm6, %v1128_v18, %v880_v5 }
 0x4e2   :  { %v892_v11 = vmul.f32 %v891_v62, %v869_v2  ;;  %v889_v28 = vsel %vm886_vm7, %v888_v26, %v884_v23 }
 0x4e3   :  { %v895_v29 = vsub.f32 1.0, %v889_v28  ;;  %v897_v32 = vmul.f32 %v889_v28, %v784_v44 }
 0x4e4   :  { %v893_v20 = vadd.f32 %v892_v11, %v790_v8 }
 0x4e6   :  { %1129 = vtanh.f32 %v893_v20 }
 0x4ec   :  { %v1130_v30 = vpop.eup %1129 }
 0x4ed   :  { %v896_v31 = vmul.f32 %v1130_v30, %v895_v29 }
 0x4ef   :  { %v898_v33 = vadd.f32 %v897_v32, %v896_v31 }
 0x4f1   :  { %900 = vst [vmem:[#allocation8 + $0x30] sm:$0xff] %v898_v33  ;;  %921 = vmatmul.f32.vlgmr.msrb.gmra.mxu1 %v898_v33  ;;  %941 = vmatmul.f32.vlgmr.msrb.gmra.mxu2 %v898_v33 }
 0x4f2   :  { %961 = vmatmul.f32.vlgmr.msrb.gmra.mxu3 %v898_v33 }
 0x56e   :  { %v922_v37 = vpop.f32.mrf.mxu1 }
 0x56f   :  { %v965_v40 = vadd.f32 %v922_v37, %v902_v34 }
 0x571   :  { %v1050_v43 = vmul.f32 -1.442695, %v965_v40 }
 0x573   :  { %1131 = vpow2.f32 %v1050_v43 }
 0x574   :  { %v942_v56 = vpop.f32.mrf.mxu2 }
 0x575   :  { %v985_v35 = vadd.f32 %v942_v56, %v903_v46  ;;  %v962_v39 = vpop.f32.mrf.mxu3 }
 0x576   :  { %v1005_v4 = vadd.f32 %v1829_v45, %v962_v39 }
 0x577   :  { %v1051_v54 = vmul.f32 -1.442695, %v985_v35 }
 0x579   :  { %v1132_v55 = vpop.eup %1131  ;;  %1133 = vpow2.f32 %v1051_v54 }
 0x57a   :  { %v969_v48 = vadd.f32 1.0, %v1132_v55 }
 0x57c   :  { %1135 = vrcp.f32 %v969_v48  ;;  %v981_v53 = vand.u32 2147483648, %v969_v48  ;;  %v979_v57 = vand.u32 2147483647, %v969_v48  ;;  %vm975_vm9 = vweird.f32 %v969_v48 }
 0x57e   :  { %v982_v0 = vor.u32 1.1754944e-38, %v981_v53  ;;  %vm980_vm11 = vcmp.eq.f32.partialorder %v979_v57, 8.507059e+37 }
 0x57f   :  { %v1134_v49 = vpop.eup %1133 }
 0x580   :  { %v989_v50 = vadd.f32 1.0, %v1134_v49 }
 0x582   :  { %v1136_v51 = vpop.eup %1135  ;;  %1137 = vrcp.f32 %v989_v50  ;;  %v1001_v10 = vand.u32 2147483648, %v989_v50  ;;  %v999_v13 = vand.u32 2147483647, %v989_v50  ;;  %vm995_vm13 = vweird.f32 %v989_v50 }
 0x583   :  { %v971_v61 = vmul.f32 %v1136_v51, %v969_v48  ;;  %vm976_vm8 = vweird.f32 %v1136_v51 }
 0x584   :  { %vm977_vm10 = vmor %vm975_vm9, %vm976_vm8  ;;  %v1002_v18 = vor.u32 1.1754944e-38, %v1001_v10  ;;  %vm1000_vm15 = vcmp.eq.f32.partialorder %v999_v13, 8.507059e+37 }
 0x585   :  { %v972_v47 = vsub.f32 1.0, %v971_v61 }
 0x587   :  { %v973_v59 = vmul.f32 %v1136_v51, %v972_v47 }
 0x588   :  { %v1138_v36 = vpop.eup %1137 }
 0x589   :  { %v991_v44 = vmul.f32 %v1138_v36, %v989_v50  ;;  %v974_v58 = vadd.f32 %v1136_v51, %v973_v59  ;;  %vm996_vm12 = vweird.f32 %v1138_v36 }
 0x58a   :  { %vm997_vm14 = vmor %vm995_vm13, %vm996_vm12 }
 0x58b   :  { %v992_v1 = vsub.f32 1.0, %v991_v44  ;;  %v978_v3 = vsel %vm977_vm10, %v1136_v51, %v974_v58 }
 0x58c   :  { %v983_v7 = vsel %vm980_vm11, %v982_v0, %v978_v3 }
 0x58d   :  { %v993_v9 = vmul.f32 %v1138_v36, %v992_v1  ;;  %v1006_v12 = vmul.f32 %v1005_v4, %v983_v7 }
 0x58f   :  { %v994_v15 = vadd.f32 %v1138_v36, %v993_v9  ;;  %v1007_v16 = vadd.f32 %v1006_v12, %v904_v6 }
 0x591   :  { %v998_v19 = vsel %vm997_vm14, %v1138_v36, %v994_v15  ;;  %1139 = vtanh.f32 %v1007_v16 }
 0x592   :  { %v1003_v21 = vsel %vm1000_vm15, %v1002_v18, %v998_v19 }
 0x593   :  { %v1009_v22 = vsub.f32 1.0, %v1003_v21  ;;  %v1011_v25 = vmul.f32 %v1003_v21, %v898_v33 }
 0x597   :  { %v1140_v45 = vpop.eup %1139 }
 0x598   :  { %v1010_v24 = vmul.f32 %v1140_v45, %v1009_v22 }
 0x59a   :  { %v1012_v42 = vadd.f32 %v1011_v25, %v1010_v24 }
 0x59c   :  { %1014 = vst [vmem:[#allocation8 + $0x38] sm:$0xff] %v1012_v42 }
 0x59d   :  { %1028 = dma.vmem_to_hbm [thread:$0]  %s1021_s26, 1024, %s1023_s29, [#allocation5], %s1274_s30, %s1274_s30, %s1275_s4  }
 0x59e   :  { %1266 = dma.done.wait [#allocation5], 1024  }
 0x59f   :  { %1267 = vsyncadd [#allocation5], 4294966272 }
 0x5a0   :  { %1033 = vsyncpa [#allocation4], 1 }
 0x5a1   :  { %1034 = vsyncpa [#allocation7], 1 }
 0x5a2   :  { %1035 = vsyncpa [#allocation5], 1 }

</bundles_post_ra>
